<compile_context>
chip_gen: v5e
topology: v5e:2x2
jax: 0.10.0
libtpu: 0.0.40
codegen_flags: <defaults>
</compile_context>

<pallas_src>
from functools import partial

import jax
import jax.numpy as jnp
from jax import lax
from jax.experimental import pallas as pl
from jax.experimental.pallas import tpu as pltpu


def _round_up(x, m):
    return -(-x // m) * m


def _gather_add_relu_kernel(cols_ref, thi_ref, tlo_ref, out_ref, *,
                            n_stripes, stripes_per_block, block_width):
    """out[r, :] = ReLU(sum_s tbl[block-local one-hot of cols[r, s]]) for this tile.

    cols_ref: (tm, n_stripes) int32, block-local row offsets (stripe offset folded).
    thi_ref : (K, hout) bf16, hi half of the projected, block-laid-out table.
    tlo_ref : (K, hout) bf16, lo (residual) half.
    out_ref : (tm, hout) f32.
    """
    tm = out_ref.shape[0]
    n_blocks = thi_ref.shape[0] // block_width
    # One iota per tile, shared by every stripe (review item: hoist/cheapen iota).
    iota = lax.broadcasted_iota(jnp.int32, (tm, block_width), 1)

    blocks = []
    for q in range(n_blocks):
        oh = None
        for p in range(stripes_per_block):
            s = q * stripes_per_block + p
            if s >= n_stripes:
                break
            col = cols_ref[:, s:s + 1]                    # (tm, 1) int32
            e = (iota == col).astype(jnp.bfloat16)        # 1 compare + 1 select
            oh = e if oh is None else oh + e              # disjoint lanes -> add ok
        blocks.append(oh)
    lhs = blocks[0] if n_blocks == 1 else jnp.concatenate(blocks, axis=-1)

    # Two bf16 MXU matmuls (hi + lo residual), accumulated in f32.
    acc = jnp.dot(lhs, thi_ref[...], preferred_element_type=jnp.float32)
    acc = acc + jnp.dot(lhs, tlo_ref[...], preferred_element_type=jnp.float32)
    out_ref[...] = jnp.maximum(acc, 0.0).astype(out_ref.dtype)


def _chip_info():
    """(num tensorcores per device, working VMEM budget in bytes)."""
    try:
        kind = jax.devices()[0].device_kind.lower()
    except Exception:  # pragma: no cover
        kind = ""
    two_core = ("v7" in kind) or ("7x" in kind)
    n_cores = 2 if two_core else 1
    budget = (44 << 20) if two_core else (100 << 20)   # 64 MiB vs 128 MiB physical
    return n_cores, budget


def _per_step_vmem_bytes(tm, k_dim, hout, n_stripes):
    cols_tile = tm * _round_up(max(n_stripes, 1), 128) * 4   # int32, lane-padded
    out_tile = tm * hout * 4
    lhs = tm * k_dim * 2                                     # assembled bf16 one-hot
    work = tm * 128 * 4 * 3                                  # iota + compare temps
    acc = tm * hout * 4
    return 2 * cols_tile + 2 * out_tile + lhs + work + acc


def _pick_tile_rows(nr, k_dim, hout, n_stripes, n_cores, vmem_budget, target):
    tm = max(8, min(_round_up(target, 8), _round_up(nr, 8)))
    tm = (tm // 8) * 8
    fixed = 2 * (k_dim * hout * 2) * 2                       # hi+lo tables (+slack)
    while tm > 8 and fixed + _per_step_vmem_bytes(tm, k_dim, hout, n_stripes) > vmem_budget:
        tm = max(8, ((tm // 2) // 8) * 8)
    if n_cores > 1:
        # Only on multi-TC chips: keep enough steps so each core still pipelines.
        min_steps = 4 * n_cores
        if pl.cdiv(nr, tm) < min_steps and nr > 8 * min_steps:
            tm = max(8, _round_up(pl.cdiv(nr, min_steps), 8))
    return tm


def get_four_embedding(pos_s, pos_e, pe_ss, pe_se, pe_es, pe_ee, w, b,
                       max_sep_len, *, tile_rows=None, pack_rows=None):
    """Equivalent of Get_four_embedding.forward (four-table mode)."""
    # TODO(synk): the 'ff_two' mode branch (2-table fusion) is not implemented here.
    bsz, seq = pos_s.shape
    vocab, h = pe_ss.shape                       # vocab == 2 * max_sep_len + 1
    f32 = jnp.float32
    hp = jax.lax.Precision.HIGHEST

    # --- Hoist the Linear(4H, H) through the gather (four tiny matmuls, once).
    w = w.astype(f32)
    b = b.astype(f32)
    tables = [
        jnp.dot(pe_ss.astype(f32), w[:h], precision=hp) + b,   # bias folded once
        jnp.dot(pe_se.astype(f32), w[h:2 * h], precision=hp),
        jnp.dot(pe_es.astype(f32), w[2 * h:3 * h], precision=hp),
        jnp.dot(pe_ee.astype(f32), w[3 * h:], precision=hp),
    ]

    # --- Relative-position indices, made table-LOCAL and clamped to the valid range.
    # TODO(synk): PyTorch indexing would raise on |pos diff| > max_sep_len; we clamp.
    def rel(a, c_):
        d = (a[:, :, None] - c_[:, None, :]).reshape(-1)
        return jnp.clip(d + max_sep_len, 0, vocab - 1).astype(jnp.int32)

    idx = jnp.stack([rel(pos_s, pos_s), rel(pos_s, pos_e),
                     rel(pos_e, pos_s), rel(pos_e, pos_e)], axis=-1)   # [N, 4]
    n = idx.shape[0]

    # --- Row packing g (lane-dense output) + lane-aligned stripe-block layout.
    if pack_rows is not None:
        g = max(1, int(pack_rows))
    elif h % 128 == 0:
        g = 1
    elif h < 128 and 128 % h == 0:
        g = 128 // h
    else:
        g = 1

    def _layout(g_):
        n_stripes_ = 4 * g_
        hw = h * g_
        hout_ = hw if hw % 128 == 0 else _round_up(hw, 128)   # always lane-dense
        if vocab <= 128:
            bw_ = 128
            c_ = 128 // vocab                                  # stripes per block
        else:
            bw_ = _round_up(vocab, 128)
            c_ = 1
        n_blocks_ = -(-n_stripes_ // c_)
        return n_stripes_, hout_, bw_, c_, n_blocks_, n_blocks_ * bw_

    n_stripes, hout, bw, c, n_blocks, k_dim = _layout(g)
    if pack_rows is None and g > 1 and 2 * 2 * k_dim * hout > (12 << 20):
        g = 1                                                  # keep tables small
        n_stripes, hout, bw, c, n_blocks, k_dim = _layout(g)

    # --- Build the block-laid-out projected table; split into hi/lo bf16 halves.
    # Stripe s = slot*4 + table_k lives in block q = s // c at lane/row offset
    # q*bw + (s % c)*vocab and writes output lanes [slot*h, slot*h + h).
    rhs = jnp.zeros((k_dim, hout), f32)
    for s in range(n_stripes):
        slot, kk = divmod(s, 4)
        q, p = divmod(s, c)
        r0 = q * bw + p * vocab
        rhs = rhs.at[r0:r0 + vocab, slot * h:(slot + 1) * h].set(tables[kk])
    t_hi = rhs.astype(jnp.bfloat16)
    t_lo = (rhs - t_hi.astype(f32)).astype(jnp.bfloat16)

    # --- Pack indices: per physical row, n_stripes block-local row offsets.
    n_pad_g = _round_up(n, g)
    if n_pad_g != n:
        idx = jnp.pad(idx, ((0, n_pad_g - n), (0, 0)))
    nr = n_pad_g // g
    cols = idx.reshape(nr, n_stripes)                          # stripe s = slot*4 + k
    stripe_off = (jnp.arange(n_stripes, dtype=jnp.int32) % c) * vocab
    cols = cols + stripe_off[None, :]                          # fold in-block offset

    # --- Chip-gated tiling and explicit VMEM accounting.
    n_cores, vmem_budget = _chip_info()
    tm = _pick_tile_rows(nr, k_dim, hout, n_stripes, n_cores, vmem_budget,
                         target=(tile_rows or 1024))
    nr_pad = _round_up(nr, tm)
    if nr_pad != nr:
        cols = jnp.pad(cols, ((0, nr_pad - nr), (0, 0)))
    grid = (nr_pad // tm,)

    need = (_per_step_vmem_bytes(tm, k_dim, hout, n_stripes)
            + 2 * (k_dim * hout * 2) * 2)
    vmem_limit = int(min(vmem_budget, max(16 << 20, int(1.5 * need))))

    kernel = partial(_gather_add_relu_kernel, n_stripes=n_stripes,
                     stripes_per_block=c, block_width=bw)

    out_packed = pl.pallas_call(
        kernel,
        out_shape=jax.ShapeDtypeStruct((nr_pad, hout), jnp.float32),
        grid_spec=pltpu.PrefetchScalarGridSpec(
            num_scalar_prefetch=0,
            grid=grid,
            in_specs=[
                pl.BlockSpec((tm, n_stripes), lambda i: (i, 0)),
                # Whole-array VMEM residents: not pipelined, not double-buffered.
                pl.BlockSpec(memory_space=pltpu.MemorySpace.VMEM),
                pl.BlockSpec(memory_space=pltpu.MemorySpace.VMEM),
            ],
            out_specs=pl.BlockSpec((tm, hout), lambda i: (i, 0)),
        ),
        compiler_params=pltpu.CompilerParams(
            dimension_semantics=("parallel",),
            vmem_limit_bytes=vmem_limit),
    )(cols, t_hi, t_lo)

    # --- Unpack: row-major view of the packed rows, drop padding.
    if g > 1:
        out = out_packed[:, :g * h].reshape(nr_pad * g, h)
    else:
        out = out_packed[:, :h]
    return out[:n].reshape(bsz, seq, seq, h)


if __name__ == "__main__":
    # Small, deterministic configuration.
    B, S, H = 2, 8, 32            # batch, max_seq_len, Config.total (hidden)
    MAX_SEP = 16                  # Config.max_sep_len
    VOCAB = 2 * MAX_SEP + 1       # relative-distance table size

    key = jax.random.PRNGKey(0)
    k = jax.random.split(key, 8)

    pe_ss = jax.random.normal(k[0], (VOCAB, H), jnp.float32)
    pe_se = jax.random.normal(k[1], (VOCAB, H), jnp.float32)
    pe_es = jax.random.normal(k[2], (VOCAB, H), jnp.float32)
    pe_ee = jax.random.normal(k[3], (VOCAB, H), jnp.float32)
    w = jax.random.normal(k[4], (4 * H, H), jnp.float32) * 0.05   # Linear weight^T
    b = jax.random.normal(k[5], (H,), jnp.float32) * 0.05

    pos_s = jax.random.randint(k[6], (B, S), 0, S, dtype=jnp.int32)
    pos_e = jax.random.randint(k[7], (B, S), 0, S, dtype=jnp.int32)

    result = get_four_embedding(pos_s, pos_e, pe_ss, pe_se, pe_es, pe_ee,
                                w, b, MAX_SEP)
    result = jax.block_until_ready(result)

    # Pure-JAX reference of the original forward pass (true f32 matmul).
    def ref_forward():
        hp = jax.lax.Precision.HIGHEST
        d_ss = pos_s[:, :, None] - pos_s[:, None, :]
        d_se = pos_s[:, :, None] - pos_e[:, None, :]
        d_es = pos_e[:, :, None] - pos_s[:, None, :]
        d_ee = pos_e[:, :, None] - pos_e[:, None, :]
        e = jnp.concatenate([pe_ss[d_ss + MAX_SEP], pe_se[d_se + MAX_SEP],
                             pe_es[d_es + MAX_SEP], pe_ee[d_ee + MAX_SEP]],
                            axis=-1)
        return jnp.maximum(jnp.dot(e, w, precision=hp) + b, 0.0)

    ref = ref_forward()
    assert result.shape == (B, S, S, H), result.shape
    err = float(jnp.max(jnp.abs(result - ref)))
    assert jnp.allclose(result, ref, atol=1e-4, rtol=1e-4), err
    print("KERNEL_OK")
</pallas_src>

<mosaic_0001>
module attributes {stable_mosaic.version = 11 : i64} {
  func.func @_gather_add_relu_kernel(%arg0: i32, %arg1: memref<32x16xi32, #tpu.memory_space<vmem>>, %arg2: memref<768x128xbf16, #tpu.memory_space<vmem>>, %arg3: memref<768x128xbf16, #tpu.memory_space<vmem>>, %arg4: memref<32x128xf32, #tpu.memory_space<vmem>>) attributes {dimension_semantics = [#tpu.dimension_semantics<parallel>], iteration_bounds = array<i64: 1>, scalar_prefetch = 0 : i64, scratch_operands = 0 : i64, tpu.core_type = #tpu.core_type<tc>, window_params = [{transform_indices = @transform_0, window_bounds = array<i64: 32, 16>}, {pipeline_mode = #tpu.pipeline_mode<synchronous>, transform_indices = @transform_1, window_bounds = array<i64: 768, 128>}, {pipeline_mode = #tpu.pipeline_mode<synchronous>, transform_indices = @transform_2, window_bounds = array<i64: 768, 128>}, {transform_indices = @transform_3, window_bounds = array<i64: 32, 128>}]} {
    %0 = tpu.iota {dimensions = array<i32: 1>} : vector<32x128xi32>
    %c0 = arith.constant 0 : index
    %c0_0 = arith.constant 0 : index
    %1 = vector.load %arg1[%c0, %c0_0] : memref<32x16xi32, #tpu.memory_space<vmem>>, vector<32x1xi32>
    %2 = vector.broadcast %1 : vector<32x1xi32> to vector<32x128xi32>
    %3 = arith.cmpi eq, %0, %2 : vector<32x128xi32>
    %4 = arith.extui %3 : vector<32x128xi1> to vector<32x128xi32>
    %5 = arith.sitofp %4 : vector<32x128xi32> to vector<32x128xf32>
    %6 = arith.truncf %5 : vector<32x128xf32> to vector<32x128xbf16>
    %c0_1 = arith.constant 0 : index
    %c1 = arith.constant 1 : index
    %7 = vector.load %arg1[%c0_1, %c1] : memref<32x16xi32, #tpu.memory_space<vmem>>, vector<32x1xi32>
    %8 = vector.broadcast %7 : vector<32x1xi32> to vector<32x128xi32>
    %9 = arith.cmpi eq, %0, %8 : vector<32x128xi32>
    %10 = arith.extui %9 : vector<32x128xi1> to vector<32x128xi32>
    %11 = arith.sitofp %10 : vector<32x128xi32> to vector<32x128xf32>
    %12 = arith.truncf %11 : vector<32x128xf32> to vector<32x128xbf16>
    %13 = arith.addf %6, %12 : vector<32x128xbf16>
    %c0_2 = arith.constant 0 : index
    %c2 = arith.constant 2 : index
    %14 = vector.load %arg1[%c0_2, %c2] : memref<32x16xi32, #tpu.memory_space<vmem>>, vector<32x1xi32>
    %15 = vector.broadcast %14 : vector<32x1xi32> to vector<32x128xi32>
    %16 = arith.cmpi eq, %0, %15 : vector<32x128xi32>
    %17 = arith.extui %16 : vector<32x128xi1> to vector<32x128xi32>
    %18 = arith.sitofp %17 : vector<32x128xi32> to vector<32x128xf32>
    %19 = arith.truncf %18 : vector<32x128xf32> to vector<32x128xbf16>
    %20 = arith.addf %13, %19 : vector<32x128xbf16>
    %c0_3 = arith.constant 0 : index
    %c3 = arith.constant 3 : index
    %21 = vector.load %arg1[%c0_3, %c3] : memref<32x16xi32, #tpu.memory_space<vmem>>, vector<32x1xi32>
    %22 = vector.broadcast %21 : vector<32x1xi32> to vector<32x128xi32>
    %23 = arith.cmpi eq, %0, %22 : vector<32x128xi32>
    %24 = arith.extui %23 : vector<32x128xi1> to vector<32x128xi32>
    %25 = arith.sitofp %24 : vector<32x128xi32> to vector<32x128xf32>
    %26 = arith.truncf %25 : vector<32x128xf32> to vector<32x128xbf16>
    %c0_4 = arith.constant 0 : index
    %c4 = arith.constant 4 : index
    %27 = vector.load %arg1[%c0_4, %c4] : memref<32x16xi32, #tpu.memory_space<vmem>>, vector<32x1xi32>
    %28 = vector.broadcast %27 : vector<32x1xi32> to vector<32x128xi32>
    %29 = arith.cmpi eq, %0, %28 : vector<32x128xi32>
    %30 = arith.extui %29 : vector<32x128xi1> to vector<32x128xi32>
    %31 = arith.sitofp %30 : vector<32x128xi32> to vector<32x128xf32>
    %32 = arith.truncf %31 : vector<32x128xf32> to vector<32x128xbf16>
    %33 = arith.addf %26, %32 : vector<32x128xbf16>
    %c0_5 = arith.constant 0 : index
    %c5 = arith.constant 5 : index
    %34 = vector.load %arg1[%c0_5, %c5] : memref<32x16xi32, #tpu.memory_space<vmem>>, vector<32x1xi32>
    %35 = vector.broadcast %34 : vector<32x1xi32> to vector<32x128xi32>
    %36 = arith.cmpi eq, %0, %35 : vector<32x128xi32>
    %37 = arith.extui %36 : vector<32x128xi1> to vector<32x128xi32>
    %38 = arith.sitofp %37 : vector<32x128xi32> to vector<32x128xf32>
    %39 = arith.truncf %38 : vector<32x128xf32> to vector<32x128xbf16>
    %40 = arith.addf %33, %39 : vector<32x128xbf16>
    %c0_6 = arith.constant 0 : index
    %c6 = arith.constant 6 : index
    %41 = vector.load %arg1[%c0_6, %c6] : memref<32x16xi32, #tpu.memory_space<vmem>>, vector<32x1xi32>
    %42 = vector.broadcast %41 : vector<32x1xi32> to vector<32x128xi32>
    %43 = arith.cmpi eq, %0, %42 : vector<32x128xi32>
    %44 = arith.extui %43 : vector<32x128xi1> to vector<32x128xi32>
    %45 = arith.sitofp %44 : vector<32x128xi32> to vector<32x128xf32>
    %46 = arith.truncf %45 : vector<32x128xf32> to vector<32x128xbf16>
    %c0_7 = arith.constant 0 : index
    %c7 = arith.constant 7 : index
    %47 = vector.load %arg1[%c0_7, %c7] : memref<32x16xi32, #tpu.memory_space<vmem>>, vector<32x1xi32>
    %48 = vector.broadcast %47 : vector<32x1xi32> to vector<32x128xi32>
    %49 = arith.cmpi eq, %0, %48 : vector<32x128xi32>
    %50 = arith.extui %49 : vector<32x128xi1> to vector<32x128xi32>
    %51 = arith.sitofp %50 : vector<32x128xi32> to vector<32x128xf32>
    %52 = arith.truncf %51 : vector<32x128xf32> to vector<32x128xbf16>
    %53 = arith.addf %46, %52 : vector<32x128xbf16>
    %c0_8 = arith.constant 0 : index
    %c8 = arith.constant 8 : index
    %54 = vector.load %arg1[%c0_8, %c8] : memref<32x16xi32, #tpu.memory_space<vmem>>, vector<32x1xi32>
    %55 = vector.broadcast %54 : vector<32x1xi32> to vector<32x128xi32>
    %56 = arith.cmpi eq, %0, %55 : vector<32x128xi32>
    %57 = arith.extui %56 : vector<32x128xi1> to vector<32x128xi32>
    %58 = arith.sitofp %57 : vector<32x128xi32> to vector<32x128xf32>
    %59 = arith.truncf %58 : vector<32x128xf32> to vector<32x128xbf16>
    %60 = arith.addf %53, %59 : vector<32x128xbf16>
    %c0_9 = arith.constant 0 : index
    %c9 = arith.constant 9 : index
    %61 = vector.load %arg1[%c0_9, %c9] : memref<32x16xi32, #tpu.memory_space<vmem>>, vector<32x1xi32>
    %62 = vector.broadcast %61 : vector<32x1xi32> to vector<32x128xi32>
    %63 = arith.cmpi eq, %0, %62 : vector<32x128xi32>
    %64 = arith.extui %63 : vector<32x128xi1> to vector<32x128xi32>
    %65 = arith.sitofp %64 : vector<32x128xi32> to vector<32x128xf32>
    %66 = arith.truncf %65 : vector<32x128xf32> to vector<32x128xbf16>
    %c0_10 = arith.constant 0 : index
    %c10 = arith.constant 10 : index
    %67 = vector.load %arg1[%c0_10, %c10] : memref<32x16xi32, #tpu.memory_space<vmem>>, vector<32x1xi32>
    %68 = vector.broadcast %67 : vector<32x1xi32> to vector<32x128xi32>
    %69 = arith.cmpi eq, %0, %68 : vector<32x128xi32>
    %70 = arith.extui %69 : vector<32x128xi1> to vector<32x128xi32>
    %71 = arith.sitofp %70 : vector<32x128xi32> to vector<32x128xf32>
    %72 = arith.truncf %71 : vector<32x128xf32> to vector<32x128xbf16>
    %73 = arith.addf %66, %72 : vector<32x128xbf16>
    %c0_11 = arith.constant 0 : index
    %c11 = arith.constant 11 : index
    %74 = vector.load %arg1[%c0_11, %c11] : memref<32x16xi32, #tpu.memory_space<vmem>>, vector<32x1xi32>
    %75 = vector.broadcast %74 : vector<32x1xi32> to vector<32x128xi32>
    %76 = arith.cmpi eq, %0, %75 : vector<32x128xi32>
    %77 = arith.extui %76 : vector<32x128xi1> to vector<32x128xi32>
    %78 = arith.sitofp %77 : vector<32x128xi32> to vector<32x128xf32>
    %79 = arith.truncf %78 : vector<32x128xf32> to vector<32x128xbf16>
    %80 = arith.addf %73, %79 : vector<32x128xbf16>
    %c0_12 = arith.constant 0 : index
    %c12 = arith.constant 12 : index
    %81 = vector.load %arg1[%c0_12, %c12] : memref<32x16xi32, #tpu.memory_space<vmem>>, vector<32x1xi32>
    %82 = vector.broadcast %81 : vector<32x1xi32> to vector<32x128xi32>
    %83 = arith.cmpi eq, %0, %82 : vector<32x128xi32>
    %84 = arith.extui %83 : vector<32x128xi1> to vector<32x128xi32>
    %85 = arith.sitofp %84 : vector<32x128xi32> to vector<32x128xf32>
    %86 = arith.truncf %85 : vector<32x128xf32> to vector<32x128xbf16>
    %c0_13 = arith.constant 0 : index
    %c13 = arith.constant 13 : index
    %87 = vector.load %arg1[%c0_13, %c13] : memref<32x16xi32, #tpu.memory_space<vmem>>, vector<32x1xi32>
    %88 = vector.broadcast %87 : vector<32x1xi32> to vector<32x128xi32>
    %89 = arith.cmpi eq, %0, %88 : vector<32x128xi32>
    %90 = arith.extui %89 : vector<32x128xi1> to vector<32x128xi32>
    %91 = arith.sitofp %90 : vector<32x128xi32> to vector<32x128xf32>
    %92 = arith.truncf %91 : vector<32x128xf32> to vector<32x128xbf16>
    %93 = arith.addf %86, %92 : vector<32x128xbf16>
    %c0_14 = arith.constant 0 : index
    %c14 = arith.constant 14 : index
    %94 = vector.load %arg1[%c0_14, %c14] : memref<32x16xi32, #tpu.memory_space<vmem>>, vector<32x1xi32>
    %95 = vector.broadcast %94 : vector<32x1xi32> to vector<32x128xi32>
    %96 = arith.cmpi eq, %0, %95 : vector<32x128xi32>
    %97 = arith.extui %96 : vector<32x128xi1> to vector<32x128xi32>
    %98 = arith.sitofp %97 : vector<32x128xi32> to vector<32x128xf32>
    %99 = arith.truncf %98 : vector<32x128xf32> to vector<32x128xbf16>
    %100 = arith.addf %93, %99 : vector<32x128xbf16>
    %c0_15 = arith.constant 0 : index
    %c15 = arith.constant 15 : index
    %101 = vector.load %arg1[%c0_15, %c15] : memref<32x16xi32, #tpu.memory_space<vmem>>, vector<32x1xi32>
    %102 = vector.broadcast %101 : vector<32x1xi32> to vector<32x128xi32>
    %103 = arith.cmpi eq, %0, %102 : vector<32x128xi32>
    %104 = arith.extui %103 : vector<32x128xi1> to vector<32x128xi32>
    %105 = arith.sitofp %104 : vector<32x128xi32> to vector<32x128xf32>
    %106 = arith.truncf %105 : vector<32x128xf32> to vector<32x128xbf16>
    %107 = tpu.concatenate %20, %40, %60, %80, %100, %106 in 1 : vector<32x128xbf16>, vector<32x128xbf16>, vector<32x128xbf16>, vector<32x128xbf16>, vector<32x128xbf16>, vector<32x128xbf16> -> vector<32x768xbf16>
    %c0_16 = arith.constant 0 : index
    %c0_17 = arith.constant 0 : index
    %108 = vector.load %arg2[%c0_16, %c0_17] : memref<768x128xbf16, #tpu.memory_space<vmem>>, vector<768x128xbf16>
    %cst = arith.constant dense<0.000000e+00> : vector<32x128xf32>
    %109 = tpu.matmul %107, %108, %cst {dimension_numbers = #tpu.dot_dimension_numbers<[1], [0], [0], [1], [0, 0, 1, 1], [], []>} : vector<32x768xbf16>, vector<768x128xbf16>, vector<32x128xf32> -> vector<32x128xf32>
    %c0_18 = arith.constant 0 : index
    %c0_19 = arith.constant 0 : index
    %110 = vector.load %arg3[%c0_18, %c0_19] : memref<768x128xbf16, #tpu.memory_space<vmem>>, vector<768x128xbf16>
    %cst_20 = arith.constant dense<0.000000e+00> : vector<32x128xf32>
    %111 = tpu.matmul %107, %110, %cst_20 {dimension_numbers = #tpu.dot_dimension_numbers<[1], [0], [0], [1], [0, 0, 1, 1], [], []>} : vector<32x768xbf16>, vector<768x128xbf16>, vector<32x128xf32> -> vector<32x128xf32>
    %112 = arith.addf %109, %111 : vector<32x128xf32>
    %cst_21 = arith.constant 0.000000e+00 : f32
    %113 = vector.broadcast %cst_21 : f32 to vector<32x128xf32>
    %114 = arith.maximumf %112, %113 : vector<32x128xf32>
    %c0_22 = arith.constant 0 : index
    %c0_23 = arith.constant 0 : index
    %115 = vector.load %arg4[%c0_22, %c0_23] : memref<32x128xf32, #tpu.memory_space<vmem>>, vector<32x128xf32>
    tpu.vector_store %arg4[%c0_22, %c0_23], %114 {strides = array<i32>} : memref<32x128xf32, #tpu.memory_space<vmem>>, vector<32x128xf32>,
    return
  }
  func.func @transform_0(%arg0: i32) -> (i32, i32) {
    %c0_i32 = arith.constant 0 : i32
    %c0_i32_0 = arith.constant 0 : i32
    return %arg0, %c0_i32 : i32, i32
  }
  func.func @transform_1(%arg0: i32) -> (i32, i32) {
    %c0_i32 = arith.constant 0 : i32
    %c0_i32_0 = arith.constant 0 : i32
    %c0_i32_1 = arith.constant 0 : i32
    return %c0_i32, %c0_i32_0 : i32, i32
  }
  func.func @transform_2(%arg0: i32) -> (i32, i32) {
    %c0_i32 = arith.constant 0 : i32
    %c0_i32_0 = arith.constant 0 : i32
    %c0_i32_1 = arith.constant 0 : i32
    return %c0_i32, %c0_i32_0 : i32, i32
  }
  func.func @transform_3(%arg0: i32) -> (i32, i32) {
    %c0_i32 = arith.constant 0 : i32
    %c0_i32_0 = arith.constant 0 : i32
    return %arg0, %c0_i32 : i32, i32
  }
}

</mosaic_0001>

<bundles_post_ra>
// kernel: tpu_custom_call.1
= control target key start
LH: loop header
LB: loop body
LE: loop exit
PB: predicated region body
PF: predicated region fallthrough
CT: control target
= control target key end

     0   :  { %8 = vsyncpa [#allocation3], 0  ;;  %s2848_s0 = inlined_call_operand.vmem [shape: s32[32,16], index: 0, kind: input, shape index: {}]   ;;  %s2849_s1 = inlined_call_operand.hbm [shape: bf16[768,128], index: 1, kind: input, shape index: {}]   ;;  %s2850_s2 = inlined_call_operand.hbm [shape: bf16[768,128], index: 2, kind: input, shape index: {}]   ;;  %s2851_s3 = inlined_call_operand.hbm [shape: f32[32,128], index: 3, kind: output, shape index: {}]  }
   0x1   :  { %9 = vsyncpa [#allocation6], 0 }
   0x2   :  { %10 = vsyncpa [#allocation4], 0  ;;  %s17_s14 = sshll.u32 %s2849_s1, 4  ;;  %s2459_s15 = smov [#allocation2]   ;;  %s18_s14 = int_to_ptr.hbm [resolvable:$true] %s17_s14 }
   0x3   :  { %s19_s16 = sshll.u32 %s2459_s15, 4  ;;  %s30_s19 = sshll.u32 %s2850_s2, 4  ;;  %s20_s16 = int_to_ptr.vmem [resolvable:$true] %s19_s16  ;;  %s31_s19 = int_to_ptr.hbm [resolvable:$true] %s30_s19 }
   0x4   :  { %s2460_s20 = smov 64   ;;  %s2461_s21 = smov 4  }
   0x5   :  { %25 = dma.hbm_to_vmem [thread:$0]  %s18_s14, 6144, %s20_s16, [#allocation3], %s2460_s20, %s2460_s20, %s2461_s21  }
   0x6   :  { %s2462_s22 = smov [#allocation5]  }
   0x7   :  { %s32_s23 = sshll.u32 %s2462_s22, 4  ;;  %s33_s23 = int_to_ptr.vmem [resolvable:$true] %s32_s23 }
   0x8   :  { %38 = dma.hbm_to_vmem [thread:$0]  %s31_s19, 6144, %s33_s23, [#allocation6], %s2460_s20, %s2460_s20, %s2461_s21  }
   0x9   :  { %2453 = dma.done.wait [#allocation3], 6144  }
   0xa   :  { %2454 = vsyncadd [#allocation3], 4294961152 }
   0xb   :  { %2455 = dma.done.wait [#allocation6], 6144  }
   0xc   :  { %2456 = vsyncadd [#allocation6], 4294961152  ;;  %v2463_v0 = vmov 1   ;;  %v2464_v1 = vmov 0   ;;  %v2512_v2 = vld [vmem:[%s2848_s0 + $0x10] sm:$0xff]  ;;  %v2517_v3 = vld [vmem:[%s2848_s0] sm:$0xff]  ;;  %v47_v27 = vlaneseq }
   0xd   :  { %2327 = vset.pattern.permute.xlu2 %v2463_v0  ;;  %2326 = vset.pattern.permute.xlu1 %v2464_v1  ;;  %v2525_v4 = vld [vmem:[%s2848_s0 + $0x18] sm:$0xff]  ;;  %v2530_v5 = vld [vmem:[%s2848_s0 + $0x8] sm:$0xff]  ;;  %v2465_v6 = vmov 2   ;;  %v2466_v7 = vmov 3   ;;  %v2467_v8 = vmov 8   ;;  %v2468_v9 = vmov 9  }
   0xe   :  { %2325 = vset.pattern.permute.xlu0 %v2464_v1  ;;  %60 = vperm.xlu1 %2326, %v2512_v2   ;;  %v2469_v10 = vmov 6   ;;  %v2470_v11 = vmov 7   ;;  %v2471_v12 = vmov 4   ;;  %v2472_v13 = vmov 10   ;;  %v2260_v16 = vld [vmem:[#allocation5 + $0x38] sm:$0xff]  ;;  %v2259_v18 = vld [vmem:[#allocation5 + $0x30] sm:$0xff] }
   0xf   :  { %82 = vperm.xlu2 %2327, %v2517_v3   ;;  %54 = vperm.xlu0 %2325, %v2517_v3   ;;  %v2473_v14 = vmov 5   ;;  %v2474_v15 = vmov 11   ;;  %v2258_v19 = vld [vmem:[#allocation5 + $0x28] sm:$0xff]  ;;  %v2257_v21 = vld [vmem:[#allocation5 + $0x20] sm:$0xff]  ;;  %v2256_v22 = vld [vmem:[#allocation5 + $0x18] sm:$0xff]  ;;  %v2582_v31 = vand.u32 127, %v47_v27 }
  0x10   :  { %1213 = vmatpush.bf16.msra.mxu0 %v2260_v16  ;;  %v2255_v24 = vld [vmem:[#allocation5 + $0x10] sm:$0xff]  ;;  %v2254_v25 = vld [vmem:[#allocation5 + $0x8] sm:$0xff]  ;;  %v2253_v30 = vld [vmem:[#allocation5] sm:$0xff]  ;;  %v2475_v34 = vmov 0.0   ;;  %v2476_v49 = vmov 13   ;;  %s2480_s0 = smov [#allocation7]  }
  0x11   :  { %v2268_v51 = vld [vmem:[#allocation5 + $0x78] sm:$0xff]  ;;  %v2267_v1 = vld [vmem:[#allocation5 + $0x70] sm:$0xff]  ;;  %s1741_s30 = sshll.u32 %s2480_s0, 4  ;;  %s1743_s6 = sshll.u32 %s2851_s3, 4  ;;  %s1742_s30 = int_to_ptr.vmem [resolvable:$true] %s1741_s30  ;;  %s1744_s6 = int_to_ptr.hbm [resolvable:$true] %s1743_s6 }
  0x12   :  { %1232 = vmatpush.bf16.msra.mxu1 %v2268_v51  ;;  %v2282_v51 = vld [vmem:[#allocation5 + $0xe8] sm:$0xff]  ;;  %s2481_s7 = smov 128   ;;  %s2482_s8 = smov 8  }
  0x14   :  { %1214 = vmatpush.bf16.msra.mxu0 %v2259_v18 }
  0x16   :  { %63 = vperm.xlu1 %2326, %v2525_v4   ;;  %1233 = vmatpush.bf16.msra.mxu1 %v2267_v1 }
  0x17   :  { %85 = vperm.xlu2 %2327, %v2530_v5   ;;  %57 = vperm.xlu0 %2325, %v2530_v5  }
  0x18   :  { %1215 = vmatpush.bf16.msra.mxu0 %v2258_v19 }
  0x1c   :  { %1216 = vmatpush.bf16.msra.mxu0 %v2257_v21 }
  0x1e   :  { %2329 = vset.pattern.permute.xlu1 %v2463_v0 }
  0x1f   :  { %2330 = vset.pattern.permute.xlu2 %v2465_v6  ;;  %2328 = vset.pattern.permute.xlu0 %v2463_v0 }
  0x20   :  { %91 = vperm.xlu1 %2329, %v2525_v4   ;;  %126 = vperm.xlu2 %2330, %v2517_v3  }
  0x21   :  { %88 = vperm.xlu0 %2328, %v2512_v2   ;;  %1217 = vmatpush.bf16.msra.mxu0 %v2256_v22 }
  0x25   :  { %1218 = vmatpush.bf16.msra.mxu0 %v2255_v24 }
  0x28   :  { %2331 = vset.pattern.permute.xlu1 %v2465_v6  ;;  %132 = vperm.xlu2 %2330, %v2512_v2  }
  0x29   :  { %2332 = vset.pattern.permute.xlu0 %v2465_v6  ;;  %129 = vperm.xlu1 %2331, %v2530_v5  }
  0x2a   :  { %135 = vperm.xlu0 %2332, %v2525_v4   ;;  %1219 = vmatpush.bf16.msra.mxu0 %v2254_v25  ;;  %v2275_v25 = vld [vmem:[#allocation5 + $0xb0] sm:$0xff] }
  0x2e   :  { %1220 = vmatpush.bf16.msra.mxu0 %v2253_v30 }
  0x30   :  { %2334 = vset.pattern.permute.xlu2 %v2466_v7 }
  0x31   :  { %2333 = vset.pattern.permute.xlu1 %v2466_v7  ;;  %173 = vperm.xlu2 %2334, %v2530_v5  }
  0x32   :  { %2343 = vset.pattern.permute.xlu0 %v2467_v8  ;;  %170 = vperm.xlu1 %2333, %v2517_v3  }
  0x33   :  { %358 = vperm.xlu0 %2343, %v2517_v3  }
  0x39   :  { %179 = vperm.xlu2 %2334, %v2525_v4  }
  0x3a   :  { %176 = vperm.xlu1 %2333, %v2512_v2  }
  0x3b   :  { %2344 = vset.pattern.permute.xlu0 %v2468_v9 }
  0x3c   :  { %402 = vperm.xlu0 %2344, %v2517_v3  }
  0x41   :  { %2336 = vset.pattern.permute.xlu2 %v2469_v10 }
  0x42   :  { %2335 = vset.pattern.permute.xlu1 %v2469_v10  ;;  %289 = vperm.xlu2 %2336, %v2530_v5  }
  0x43   :  { %286 = vperm.xlu1 %2335, %v2517_v3  }
  0x44   :  { %408 = vperm.xlu0 %2344, %v2512_v2  }
  0x4a   :  { %2338 = vset.pattern.permute.xlu2 %v2470_v11 }
  0x4b   :  { %2337 = vset.pattern.permute.xlu1 %v2470_v11  ;;  %317 = vperm.xlu2 %2338, %v2530_v5  }
  0x4c   :  { %2353 = vset.pattern.permute.xlu0 %v2471_v12  ;;  %314 = vperm.xlu1 %2337, %v2517_v3  }
  0x4d   :  { %198 = vperm.xlu0 %2353, %v2517_v3  }
  0x53   :  { %2340 = vset.pattern.permute.xlu2 %v2472_v13 }
  0x54   :  { %2339 = vset.pattern.permute.xlu1 %v2468_v9  ;;  %430 = vperm.xlu2 %2340, %v2517_v3  }
  0x55   :  { %207 = vperm.xlu0 %2353, %v2525_v4   ;;  %405 = vperm.xlu1 %2339, %v2530_v5  }
  0x5c   :  { %2342 = vset.pattern.permute.xlu2 %v2471_v12 }
  0x5d   :  { %2358 = vset.pattern.permute.xlu0 %v2473_v14  ;;  %2341 = vset.pattern.permute.xlu1 %v2472_v13 }
  0x5e   :  { %201 = vperm.xlu2 %2342, %v2530_v5   ;;  %245 = vperm.xlu0 %2358, %v2530_v5  }
  0x5f   :  { %433 = vperm.xlu1 %2341, %v2530_v5  }
  0x66   :  { %2346 = vset.pattern.permute.xlu2 %v2474_v15  ;;  %248 = vperm.xlu0 %2358, %v2512_v2  }
  0x67   :  { %2345 = vset.pattern.permute.xlu1 %v2467_v8  ;;  %474 = vperm.xlu2 %2346, %v2517_v3  }
  0x68   :  { %361 = vperm.xlu1 %2345, %v2530_v5  }
  0x69   :  { %v83_v17 = vpop.permute.xlu2 %82 }
  0x6a   :  { %vm93_vm0 = vcmp.eq.s32.totalorder %v2582_v31, %v83_v17  ;;  %v2276_v17 = vld [vmem:[#allocation5 + $0xb8] sm:$0xff] }
  0x6b   :  { %v1761_v35 = vsel %vm93_vm0, 1.0, %v2475_v34  ;;  %1251 = vmatpush.bf16.msra.mxu2 %v2276_v17 }
  0x6e   :  { %2367 = vset.pattern.permute.xlu0 %v2476_v49 }
  0x6f   :  { %2348 = vset.pattern.permute.xlu2 %v2473_v14  ;;  %549 = vperm.xlu0 %2367, %v2530_v5  }
  0x70   :  { %2347 = vset.pattern.permute.xlu1 %v2474_v15  ;;  %242 = vperm.xlu2 %2348, %v2517_v3  }
  0x71   :  { %v86_v20 = vpop.permute.xlu2 %85  ;;  %477 = vperm.xlu1 %2347, %v2530_v5   ;;  %1252 = vmatpush.bf16.msra.mxu2 %v2275_v25  ;;  %v2277_v25 = vld [vmem:[#allocation5 + $0xc0] sm:$0xff] }
  0x72   :  { %vm94_vm3 = vcmp.eq.s32.totalorder %v2582_v31, %v86_v20 }
  0x73   :  { %v1762_v42 = vsel %vm94_vm3, 1.0, %v2475_v34 }
  0x78   :  { %2350 = vset.pattern.permute.xlu2 %v2469_v10 }
  0x79   :  { %2349 = vset.pattern.permute.xlu1 %v2469_v10  ;;  %295 = vperm.xlu2 %2350, %v2525_v4  }
  0x7a   :  { %292 = vperm.xlu1 %2349, %v2512_v2   ;;  %v127_v23 = vpop.permute.xlu2 %126 }
  0x7b   :  { %vm137_vm4 = vcmp.eq.s32.totalorder %v2582_v31, %v127_v23  ;;  %v2265_v23 = vld [vmem:[#allocation5 + $0x60] sm:$0xff] }
  0x7c   :  { %v1765_v47 = vsel %vm137_vm4, 1.0, %v2475_v34 }
  0x80   :  { %v61_v26 = vpop.permute.xlu1 %60 }
  0x81   :  { %2352 = vset.pattern.permute.xlu2 %v2470_v11  ;;  %v55_v28 = vpop.permute.xlu0 %54  ;;  %vm67_vm7 = vcmp.eq.s32.totalorder %v2582_v31, %v61_v26 }
  0x82   :  { %2351 = vset.pattern.permute.xlu1 %v2470_v11  ;;  %323 = vperm.xlu2 %2352, %v2525_v4   ;;  %v2579_v29 = vpop.permute.xlu2 %132  ;;  %vm65_vm1 = vcmp.eq.s32.totalorder %v2582_v31, %v55_v28  ;;  %v1759_v57 = vsel %vm67_vm7, 1.0, %v2475_v34  ;;  %v2264_v28 = vld [vmem:[#allocation5 + $0x58] sm:$0xff] }
  0x83   :  { %320 = vperm.xlu1 %2351, %v2512_v2   ;;  %v1757_v36 = vsel %vm65_vm1, 1.0, %v2475_v34  ;;  %vm139_vm11 = vcmp.eq.s32.totalorder %v2582_v31, %v2579_v29  ;;  %v2478_v29 = vmov 14  }
  0x84   :  { %v117_v38 = vadd.f32 %v1761_v35, %v1757_v36  ;;  %v1767_v26 = vsel %vm139_vm11, 1.0, %v2475_v34 }
  0x86   :  { %v121_v39 = vpack.c.bf16 %v117_v38, %v117_v38  ;;  %v2263_v38 = vld [vmem:[#allocation5 + $0x50] sm:$0xff] }
  0x88   :  { %v64_v32 = vpop.permute.xlu1 %63  ;;  %v153_v46 = vunpack.c.l.bf16 %v121_v39 }
  0x89   :  { %v58_v33 = vpop.permute.xlu0 %57  ;;  %vm68_vm8 = vcmp.eq.s32.totalorder %v2582_v31, %v64_v32  ;;  %v2274_v32 = vld [vmem:[#allocation5 + $0xa8] sm:$0xff] }
  0x8a   :  { %2355 = vset.pattern.permute.xlu2 %v2472_v13  ;;  %vm66_vm2 = vcmp.eq.s32.totalorder %v2582_v31, %v58_v33  ;;  %v161_v50 = vadd.f32 %v1765_v47, %v153_v46  ;;  %v1760_v58 = vsel %vm68_vm8, 1.0, %v2475_v34  ;;  %v2284_v33 = vld [vmem:[#allocation5 + $0xf8] sm:$0xff]  ;;  %1253 = vmatpush.bf16.msra.mxu2 %v2274_v32  ;;  %v2479_v46 = vmov 15  }
  0x8b   :  { %2354 = vset.pattern.permute.xlu1 %v2468_v9  ;;  %436 = vperm.xlu2 %2355, %v2512_v2   ;;  %v2591_v37 = vpop.permute.xlu2 %173  ;;  %v1758_v40 = vsel %vm66_vm2, 1.0, %v2475_v34  ;;  %v2477_v9 = vmov 12  }
  0x8c   :  { %411 = vperm.xlu1 %2354, %v2525_v4   ;;  %v118_v45 = vadd.f32 %v1762_v42, %v1758_v40  ;;  %v165_v61 = vpack.c.bf16 %v161_v50, %v161_v50  ;;  %2372 = vset.pattern.permute.xlu0 %v2477_v9  ;;  %v2283_v42 = vld [vmem:[#allocation5 + $0xf0] sm:$0xff]  ;;  %v2272_v50 = vld [vmem:[#allocation5 + $0x98] sm:$0xff]  ;;  %vm182_vm15 = vcmp.eq.s32.totalorder %v2582_v31, %v2591_v37  ;;  %v2278_v37 = vld [vmem:[#allocation5 + $0xc8] sm:$0xff] }
  0x8d   :  { %524 = vperm.xlu0 %2372, %v2512_v2   ;;  %1270 = vmatpush.bf16.msra.mxu3 %v2284_v33 }
  0x8e   :  { %v122_v48 = vpack.c.bf16 %v118_v45, %v118_v45  ;;  %v665_v7 = vunpack.c.l.b16 %v165_v61  ;;  %v2262_v45 = vld [vmem:[#allocation5 + $0x48] sm:$0xff] }
  0x90   :  { %v154_v55 = vunpack.c.l.bf16 %v122_v48 }
  0x91   :  { %1271 = vmatpush.bf16.msra.mxu3 %v2283_v42 }
  0x92   :  { %v92_v41 = vpop.permute.xlu1 %91 }
  0x93   :  { %2357 = vset.pattern.permute.xlu2 %v2471_v12  ;;  %v89_v43 = vpop.permute.xlu0 %88  ;;  %v2600_v44 = vpop.permute.xlu2 %179  ;;  %vm96_vm5 = vcmp.eq.s32.totalorder %v2582_v31, %v92_v41  ;;  %v2266_v12 = vld [vmem:[#allocation5 + $0x68] sm:$0xff]  ;;  %v2273_v41 = vld [vmem:[#allocation5 + $0xa0] sm:$0xff] }
  0x94   :  { %2356 = vset.pattern.permute.xlu1 %v2472_v13  ;;  %204 = vperm.xlu2 %2357, %v2512_v2   ;;  %vm95_vm6 = vcmp.eq.s32.totalorder %v2582_v31, %v89_v43  ;;  %v1764_v52 = vsel %vm96_vm5, 1.0, %v2475_v34  ;;  %vm184_vm0 = vcmp.eq.s32.totalorder %v2582_v31, %v2600_v44 }
  0x95   :  { %439 = vperm.xlu1 %2356, %v2525_v4   ;;  %v1763_v53 = vsel %vm95_vm6, 1.0, %v2475_v34  ;;  %v120_v62 = vadd.f32 %v1764_v52, %v1760_v58  ;;  %1234 = vmatpush.bf16.msra.mxu1 %v2266_v12  ;;  %v2261_v52 = vld [vmem:[#allocation5 + $0x40] sm:$0xff]  ;;  %v1772_v12 = vsel %vm184_vm0, 1.0, %v2475_v34 }
  0x96   :  { %v119_v63 = vadd.f32 %v1763_v53, %v1759_v57  ;;  %2377 = vset.pattern.permute.xlu0 %v2478_v29  ;;  %1254 = vmatpush.bf16.msra.mxu2 %v2273_v41 }
  0x97   :  { %v124_v10 = vpack.c.bf16 %v120_v62, %v120_v62  ;;  %599 = vperm.xlu0 %2377, %v2525_v4   ;;  %1272 = vmatpush.bf16.msra.mxu3 %v2282_v51 }
  0x98   :  { %v123_v11 = vpack.c.bf16 %v119_v63, %v119_v63  ;;  %v2269_v63 = vld [vmem:[#allocation5 + $0x80] sm:$0xff] }
  0x99   :  { %v156_v21 = vunpack.c.l.bf16 %v124_v10  ;;  %1235 = vmatpush.bf16.msra.mxu1 %v2265_v23 }
  0x9a   :  { %v155_v22 = vunpack.c.l.bf16 %v123_v11  ;;  %1255 = vmatpush.bf16.msra.mxu2 %v2272_v50 }
  0x9b   :  { %v130_v54 = vpop.permute.xlu1 %129 }
  0x9c   :  { %vm138_vm9 = vcmp.eq.s32.totalorder %v2582_v31, %v130_v54  ;;  %2360 = vset.pattern.permute.xlu2 %v2467_v8  ;;  %v2616_v56 = vpop.permute.xlu2 %289  ;;  %v136_v60 = vpop.permute.xlu0 %135  ;;  %v163_v27 = vadd.f32 %v1767_v26, %v155_v22  ;;  %v2271_v54 = vld [vmem:[#allocation5 + $0x90] sm:$0xff] }
  0x9d   :  { %v1766_v59 = vsel %vm138_vm9, 1.0, %v2475_v34  ;;  %2359 = vset.pattern.permute.xlu1 %v2467_v8  ;;  %367 = vperm.xlu2 %2360, %v2525_v4   ;;  %vm140_vm10 = vcmp.eq.s32.totalorder %v2582_v31, %v136_v60  ;;  %v2280_v60 = vld [vmem:[#allocation5 + $0xd8] sm:$0xff]  ;;  %vm298_vm5 = vcmp.eq.s32.totalorder %v2582_v31, %v2616_v56 }
  0x9e   :  { %v162_v0 = vadd.f32 %v1766_v59, %v154_v55  ;;  %364 = vperm.xlu1 %2359, %v2512_v2   ;;  %v1768_v18 = vsel %vm140_vm10, 1.0, %v2475_v34  ;;  %1236 = vmatpush.bf16.msra.mxu1 %v2264_v28  ;;  %v167_v36 = vpack.c.bf16 %v163_v27, %v163_v27  ;;  %v2281_v55 = vld [vmem:[#allocation5 + $0xe0] sm:$0xff]  ;;  %v2270_v59 = vld [vmem:[#allocation5 + $0x88] sm:$0xff] }
  0x9f   :  { %v164_v24 = vadd.f32 %v1768_v18, %v156_v21  ;;  %2380 = vset.pattern.permute.xlu0 %v2479_v46  ;;  %1256 = vmatpush.bf16.msra.mxu2 %v2271_v54 }
  0xa0   :  { %v166_v6 = vpack.c.bf16 %v162_v0, %v162_v0  ;;  %v667_v43 = vunpack.c.l.b16 %v167_v36  ;;  %1273 = vmatpush.bf16.msra.mxu3 %v2281_v55  ;;  %v2279_v0 = vld [vmem:[#allocation5 + $0xd0] sm:$0xff] }
  0xa2   :  { %v666_v8 = vunpack.c.l.b16 %v166_v6  ;;  %1237 = vmatpush.bf16.msra.mxu1 %v2263_v38 }
  0xa3   :  { %1257 = vmatpush.bf16.msra.mxu2 %v2270_v59 }
  0xa4   :  { %v2627_v13 = vpop.permute.xlu1 %170  ;;  %v2629_v16 = vpack.c.b16 %v666_v8, %v665_v7  ;;  %1274 = vmatpush.bf16.msra.mxu3 %v2280_v60  ;;  %v1770_v8 = vsel %vm182_vm15, 1.0, %v2475_v34 }
  0xa5   :  { %v2632_v19 = vpop.permute.xlu0 %358  ;;  %v2634_v20 = vpop.permute.xlu2 %317  ;;  %2362 = vset.pattern.permute.xlu2 %v2474_v15  ;;  %vm181_vm13 = vcmp.eq.s32.totalorder %v2582_v31, %v2627_v13 }
  0xa6   :  { %2361 = vset.pattern.permute.xlu1 %v2474_v15  ;;  %1221 = vmatmul.bf16.vlgmr.msra.gmra.mxu0 %v2629_v16  ;;  %v168_v15 = vpack.c.bf16 %v164_v24, %v164_v24  ;;  %v1769_v1 = vsel %vm181_vm13, 1.0, %v2475_v34  ;;  %vm326_vm6 = vcmp.eq.s32.totalorder %v2582_v31, %v2634_v20  ;;  %vm369_vm10 = vcmp.eq.s32.totalorder %v2582_v31, %v2632_v19 }
  0xa7   :  { %480 = vperm.xlu1 %2361, %v2512_v2   ;;  %483 = vperm.xlu2 %2362, %v2525_v4   ;;  %v1789_v19 = vsel %vm369_vm10, 1.0, %v2475_v34 }
  0xa8   :  { %v668_v40 = vunpack.c.l.b16 %v168_v15  ;;  %1238 = vmatpush.bf16.msra.mxu1 %v2262_v45  ;;  %1258 = vmatpush.bf16.msra.mxu2 %v2269_v63  ;;  %v1782_v15 = vsel %vm298_vm5, 1.0, %v2475_v34 }
  0xa9   :  { %1275 = vmatpush.bf16.msra.mxu3 %v2279_v0 }
  0xac   :  { %v2646_v30 = vpop.permute.xlu1 %176  ;;  %1239 = vmatpush.bf16.msra.mxu1 %v2261_v52 }
  0xad   :  { %1276 = vmatpush.bf16.msra.mxu3 %v2278_v37  ;;  %vm183_vm10 = vcmp.eq.s32.totalorder %v2582_v31, %v2646_v30 }
  0xae   :  { %v2648_v35 = vpop.permute.xlu0 %402  ;;  %v2651_v39 = vpop.permute.xlu2 %430  ;;  %v1771_v30 = vsel %vm183_vm10, 1.0, %v2475_v34 }
  0xaf   :  { %2363 = vset.pattern.permute.xlu1 %v2473_v14  ;;  %2364 = vset.pattern.permute.xlu2 %v2477_v9  ;;  %v2657_v14 = vpack.c.b16 %v668_v40, %v667_v43  ;;  %vm413_vm7 = vcmp.eq.s32.totalorder %v2582_v31, %v2648_v35  ;;  %vm441_vm8 = vcmp.eq.s32.totalorder %v2582_v31, %v2651_v39 }
  0xb0   :  { %251 = vperm.xlu1 %2363, %v2525_v4   ;;  %518 = vperm.xlu2 %2364, %v2517_v3   ;;  %v1793_v40 = vsel %vm413_vm7, 1.0, %v2475_v34  ;;  %v1797_v35 = vsel %vm441_vm8, 1.0, %v2475_v34 }
  0xb1   :  { %1277 = vmatpush.bf16.msra.mxu3 %v2277_v25  ;;  %v465_v45 = vadd.f32 %v1797_v35, %v1793_v40 }
  0xb3   :  { %v469_v54 = vpack.c.bf16 %v465_v45, %v465_v45 }
  0xb5   :  { %v2659_v47 = vpop.permute.xlu1 %286  ;;  %v501_v0 = vunpack.c.l.bf16 %v469_v54  ;;  %v2299_v54 = vld [vmem:[#allocation5 + $0x170] sm:$0xff] }
  0xb6   :  { %1226 = vmatmul.bf16.gmra.mxu0 %v2657_v14  ;;  %v2662_v48 = vpop.permute.xlu0 %408  ;;  %vm297_vm3 = vcmp.eq.s32.totalorder %v2582_v31, %v2659_v47 }
  0xb7   :  { %v1781_v23 = vsel %vm297_vm3, 1.0, %v2475_v34  ;;  %vm415_vm7 = vcmp.eq.s32.totalorder %v2582_v31, %v2662_v48 }
  0xb8   :  { %2365 = vset.pattern.permute.xlu1 %v2477_v9  ;;  %2366 = vset.pattern.permute.xlu2 %v2476_v49  ;;  %v202_v53 = vpop.permute.xlu2 %201 }
  0xb9   :  { %521 = vperm.xlu1 %2365, %v2530_v5   ;;  %546 = vperm.xlu2 %2366, %v2517_v3   ;;  %vm210_vm14 = vcmp.eq.s32.totalorder %v2582_v31, %v202_v53 }
  0xba   :  { %v1774_v7 = vsel %vm210_vm14, 1.0, %v2475_v34 }
  0xbb   :  { %v234_v44 = vadd.f32 %v1774_v7, %v1770_v8 }
  0xbd   :  { %v238_v26 = vpack.c.bf16 %v234_v44, %v234_v44 }
  0xbe   :  { %v315_v57 = vpop.permute.xlu1 %314 }
  0xbf   :  { %v199_v58 = vpop.permute.xlu0 %198  ;;  %vm325_vm1 = vcmp.eq.s32.totalorder %v2582_v31, %v315_v57  ;;  %v270_v20 = vunpack.c.l.bf16 %v238_v26 }
  0xc0   :  { %vm209_vm12 = vcmp.eq.s32.totalorder %v2582_v31, %v199_v58  ;;  %v1785_v18 = vsel %vm325_vm1, 1.0, %v2475_v34 }
  0xc1   :  { %2368 = vset.pattern.permute.xlu1 %v2478_v29  ;;  %v2672_v61 = vpop.permute.xlu2 %474  ;;  %2369 = vset.pattern.permute.xlu2 %v2478_v29  ;;  %v1773_v62 = vsel %vm209_vm12, 1.0, %v2475_v34  ;;  %v349_v27 = vadd.f32 %v1785_v18, %v1781_v23 }
  0xc2   :  { %590 = vperm.xlu1 %2368, %v2517_v3   ;;  %593 = vperm.xlu2 %2369, %v2530_v5   ;;  %v233_v6 = vadd.f32 %v1773_v62, %v1769_v1  ;;  %vm485_vm14 = vcmp.eq.s32.totalorder %v2582_v31, %v2672_v61 }
  0xc3   :  { %v353_v32 = vpack.c.bf16 %v349_v27, %v349_v27  ;;  %v2211_v27 = vld [vmem:[#allocation2 + $0x30] sm:$0xff] }
  0xc4   :  { %v237_v13 = vpack.c.bf16 %v233_v6, %v233_v6  ;;  %v1801_v6 = vsel %vm485_vm14, 1.0, %v2475_v34 }
  0xc5   :  { %v385_v39 = vunpack.c.l.bf16 %v353_v32  ;;  %v509_v8 = vadd.f32 %v1801_v6, %v501_v0  ;;  %v2214_v0 = vld [vmem:[#allocation2 + $0x48] sm:$0xff] }
  0xc6   :  { %v269_v28 = vunpack.c.l.bf16 %v237_v13 }
  0xc7   :  { %v208_v10 = vpop.permute.xlu0 %207  ;;  %v2686_v11 = vpop.permute.xlu1 %405  ;;  %v393_v53 = vadd.f32 %v1789_v19, %v385_v39  ;;  %v513_v44 = vpack.c.bf16 %v509_v8, %v509_v8  ;;  %v2216_v39 = vld [vmem:[#allocation2 + $0x58] sm:$0xff]  ;;  %v2243_v8 = vld [vmem:[#allocation2 + $0x130] sm:$0xff] }
  0xc8   :  { %vm212_vm2 = vcmp.eq.s32.totalorder %v2582_v31, %v208_v10  ;;  %vm414_vm12 = vcmp.eq.s32.totalorder %v2582_v31, %v2686_v11  ;;  %v2300_v19 = vld [vmem:[#allocation5 + $0x178] sm:$0xff] }
  0xc9   :  { %v1776_v17 = vsel %vm212_vm2, 1.0, %v2475_v34  ;;  %v1794_v58 = vsel %vm414_vm12, 1.0, %v2475_v34  ;;  %v397_v63 = vpack.c.bf16 %v393_v53, %v393_v53  ;;  %1308 = vmatpush.bf16.msrb.mxu1 %v2300_v19  ;;  %v2215_v53 = vld [vmem:[#allocation2 + $0x50] sm:$0xff] }
  0xca   :  { %v2695_v21 = vadd.f32 %v1776_v17, %v1772_v12  ;;  %2370 = vset.pattern.permute.xlu1 %v2479_v46  ;;  %v243_v22 = vpop.permute.xlu2 %242  ;;  %2371 = vset.pattern.permute.xlu2 %v2479_v46 }
  0xcb   :  { %vm253_vm4 = vcmp.eq.s32.totalorder %v2582_v31, %v243_v22  ;;  %634 = vperm.xlu1 %2370, %v2517_v3   ;;  %637 = vperm.xlu2 %2371, %v2530_v5   ;;  %v1786_v3 = vsel %vm326_vm6, 1.0, %v2475_v34  ;;  %v689_v61 = vunpack.c.l.b16 %v397_v63  ;;  %v701_v22 = vunpack.c.l.b16 %v513_v44  ;;  %v2213_v44 = vld [vmem:[#allocation2 + $0x40] sm:$0xff] }
  0xcc   :  { %v1777_v24 = vsel %vm253_vm4, 1.0, %v2475_v34  ;;  %v350_v36 = vadd.f32 %v1786_v3, %v1782_v15  ;;  %v2220_v15 = vld [vmem:[#allocation2 + $0x78] sm:$0xff]  ;;  %v2219_v3 = vld [vmem:[#allocation2 + $0x70] sm:$0xff] }
  0xcd   :  { %v277_v5 = vadd.f32 %v1777_v24, %v269_v28  ;;  %v2212_v24 = vld [vmem:[#allocation2 + $0x38] sm:$0xff]  ;;  %1634 = vmatpush.bf16.msrb.mxu3 %v2220_v15  ;;  %1309 = vmatpush.bf16.msrb.mxu1 %v2299_v54  ;;  %v2250_v54 = vld [vmem:[#allocation2 + $0x168] sm:$0xff] }
  0xce   :  { %v354_v47 = vpack.c.bf16 %v350_v36, %v350_v36  ;;  %1615 = vmatpush.bf16.msrb.mxu2 %v2212_v24  ;;  %v2207_v36 = vld [vmem:[#allocation2 + $0x10] sm:$0xff] }
  0xcf   :  { %v281_v41 = vpack.c.bf16 %v277_v5, %v277_v5  ;;  %v2208_v5 = vld [vmem:[#allocation2 + $0x18] sm:$0xff] }
  0xd0   :  { %v246_v56 = vpop.permute.xlu0 %245  ;;  %v386_v57 = vunpack.c.l.bf16 %v354_v47 }
  0xd1   :  { %vm254_vm9 = vcmp.eq.s32.totalorder %v2582_v31, %v246_v56  ;;  %v434_v33 = vpop.permute.xlu1 %433  ;;  %v677_v50 = vunpack.c.l.b16 %v281_v41  ;;  %1635 = vmatpush.bf16.msrb.mxu3 %v2219_v3  ;;  %v2218_v56 = vld [vmem:[#allocation2 + $0x68] sm:$0xff]  ;;  %v2291_v41 = vld [vmem:[#allocation5 + $0x130] sm:$0xff] }
  0xd2   :  { %v1778_v38 = vsel %vm254_vm9, 1.0, %v2475_v34  ;;  %vm442_vm11 = vcmp.eq.s32.totalorder %v2582_v31, %v434_v33  ;;  %1616 = vmatpush.bf16.msrb.mxu2 %v2211_v27  ;;  %v2292_v33 = vld [vmem:[#allocation5 + $0x138] sm:$0xff]  ;;  %v2287_v27 = vld [vmem:[#allocation5 + $0x110] sm:$0xff] }
  0xd3   :  { %v278_v42 = vadd.f32 %v1778_v38, %v270_v20  ;;  %2373 = vset.pattern.permute.xlu1 %v2477_v9  ;;  %2374 = vset.pattern.permute.xlu2 %v2476_v49  ;;  %v1798_v9 = vsel %vm442_vm11, 1.0, %v2475_v34  ;;  %v296_v1 = vpop.permute.xlu2 %295  ;;  %v2217_v38 = vld [vmem:[#allocation2 + $0x60] sm:$0xff] }
  0xd4   :  { %527 = vperm.xlu1 %2373, %v2525_v4   ;;  %552 = vperm.xlu2 %2374, %v2512_v2   ;;  %v466_v59 = vadd.f32 %v1798_v9, %v1794_v58  ;;  %vm300_vm0 = vcmp.eq.s32.totalorder %v2582_v31, %v296_v1 }
  0xd5   :  { %v282_v43 = vpack.c.bf16 %v278_v42, %v278_v42  ;;  %1636 = vmatpush.bf16.msrb.mxu3 %v2218_v56  ;;  %1289 = vmatpush.bf16.msrb.mxu0 %v2292_v33  ;;  %v1784_v40 = vsel %vm300_vm0, 1.0, %v2475_v34  ;;  %v2206_v42 = vld [vmem:[#allocation2 + $0x8] sm:$0xff] }
  0xd6   :  { %v470_v10 = vpack.c.bf16 %v466_v59, %v466_v59  ;;  %v2286_v33 = vld [vmem:[#allocation5 + $0x108] sm:$0xff] }
  0xd7   :  { %v678_v51 = vunpack.c.l.b16 %v282_v43 }
  0xd9   :  { %v2729_v52 = vpack.c.b16 %v678_v51, %v677_v50  ;;  %1637 = vmatpush.bf16.msrb.mxu3 %v2217_v38  ;;  %1290 = vmatpush.bf16.msrb.mxu0 %v2291_v41  ;;  %v2290_v50 = vld [vmem:[#allocation5 + $0x128] sm:$0xff]  ;;  %v2205_v51 = vld [vmem:[#allocation2] sm:$0xff]  ;;  %v249_v41 = vpop.permute.xlu0 %248 }
  0xda   :  { %v362_v55 = vpop.permute.xlu1 %361  ;;  %vm255_vm14 = vcmp.eq.s32.totalorder %v2582_v31, %v249_v41  ;;  %v2227_v41 = vld [vmem:[#allocation2 + $0xb0] sm:$0xff] }
  0xdb   :  { %vm370_vm13 = vcmp.eq.s32.totalorder %v2582_v31, %v362_v55  ;;  %1240 = vmatmul.bf16.vlgmr.msra.gmra.mxu1 %v2729_v52 }
  0xdc   :  { %v1790_v60 = vsel %vm370_vm13, 1.0, %v2475_v34  ;;  %2375 = vset.pattern.permute.xlu1 %v2476_v49  ;;  %2376 = vset.pattern.permute.xlu2 %v2478_v29  ;;  %v502_v49 = vunpack.c.l.bf16 %v470_v10  ;;  %v324_v17 = vpop.permute.xlu2 %323 }
  0xdd   :  { %v394_v62 = vadd.f32 %v1790_v60, %v386_v57  ;;  %555 = vperm.xlu1 %2375, %v2525_v4   ;;  %596 = vperm.xlu2 %2376, %v2512_v2   ;;  %vm328_vm1 = vcmp.eq.s32.totalorder %v2582_v31, %v324_v17  ;;  %v2289_v60 = vld [vmem:[#allocation5 + $0x120] sm:$0xff] }
  0xde   :  { %v1788_v35 = vsel %vm328_vm1, 1.0, %v2475_v34  ;;  %1638 = vmatpush.bf16.msrb.mxu3 %v2216_v39  ;;  %1291 = vmatpush.bf16.msrb.mxu0 %v2290_v50 }
  0xdf   :  { %v398_v7 = vpack.c.bf16 %v394_v62, %v394_v62  ;;  %v352_v43 = vadd.f32 %v1788_v35, %v1784_v40  ;;  %v2244_v62 = vld [vmem:[#allocation2 + $0x138] sm:$0xff]  ;;  %v2251_v35 = vld [vmem:[#allocation2 + $0x170] sm:$0xff] }
  0xe1   :  { %v690_v11 = vunpack.c.l.b16 %v398_v7  ;;  %v356_v57 = vpack.c.bf16 %v352_v43, %v352_v43 }
  0xe2   :  { %1639 = vmatpush.bf16.msrb.mxu3 %v2215_v53  ;;  %1292 = vmatpush.bf16.msrb.mxu0 %v2289_v60  ;;  %v1779_v60 = vsel %vm255_vm14, 1.0, %v2475_v34 }
  0xe3   :  { %v478_v12 = vpop.permute.xlu1 %477  ;;  %v2742_v37 = vpack.c.b16 %v690_v11, %v689_v61  ;;  %v388_v7 = vunpack.c.l.bf16 %v356_v57  ;;  %v2298_v61 = vld [vmem:[#allocation5 + $0x168] sm:$0xff]  ;;  %v2288_v11 = vld [vmem:[#allocation5 + $0x118] sm:$0xff] }
  0xe4   :  { %vm486_vm15 = vcmp.eq.s32.totalorder %v2582_v31, %v478_v12  ;;  %v1795_v12 = vsel %vm415_vm7, 1.0, %v2475_v34  ;;  %1310 = vmatpush.bf16.msrb.mxu1 %v2298_v61  ;;  %v2293_v61 = vld [vmem:[#allocation5 + $0x140] sm:$0xff] }
  0xe5   :  { %v1802_v29 = vsel %vm486_vm15, 1.0, %v2475_v34  ;;  %2378 = vset.pattern.permute.xlu1 %v2479_v46  ;;  %1259 = vmatmul.bf16.vlgmr.msra.gmra.mxu2 %v2742_v37  ;;  %v2754_v28 = vpop.permute.xlu2 %436 }
  0xe6   :  { %v510_v13 = vadd.f32 %v1802_v29, %v502_v49  ;;  %640 = vperm.xlu1 %2378, %v2512_v2   ;;  %2379 = vset.pattern.permute.xlu2 %v2479_v46  ;;  %v2210_v2 = vld [vmem:[#allocation2 + $0x28] sm:$0xff]  ;;  %vm443_vm8 = vcmp.eq.s32.totalorder %v2582_v31, %v2754_v28 }
  0xe7   :  { %643 = vperm.xlu2 %2379, %v2525_v4   ;;  %1617 = vmatpush.bf16.msrb.mxu2 %v2210_v2  ;;  %v2209_v4 = vld [vmem:[#allocation2 + $0x20] sm:$0xff]  ;;  %v1799_v49 = vsel %vm443_vm8, 1.0, %v2475_v34  ;;  %v2242_v28 = vld [vmem:[#allocation2 + $0x128] sm:$0xff] }
  0xe8   :  { %v514_v18 = vpack.c.bf16 %v510_v13, %v510_v13  ;;  %1640 = vmatpush.bf16.msrb.mxu3 %v2214_v0  ;;  %1293 = vmatpush.bf16.msrb.mxu0 %v2288_v11  ;;  %v240_v0 = vpack.c.bf16 %v2695_v21, %v2695_v21 }
  0xea   :  { %v702_v23 = vunpack.c.l.b16 %v514_v18 }
  0xeb   :  { %1618 = vmatpush.bf16.msrb.mxu2 %v2209_v4 }
  0xec   :  { %v293_v25 = vpop.permute.xlu1 %292  ;;  %v2751_v26 = vpack.c.b16 %v702_v23, %v701_v22  ;;  %1641 = vmatpush.bf16.msrb.mxu3 %v2213_v44  ;;  %v2297_v22 = vld [vmem:[#allocation5 + $0x160] sm:$0xff]  ;;  %v467_v23 = vadd.f32 %v1799_v49, %v1795_v12  ;;  %1294 = vmatpush.bf16.msrb.mxu0 %v2287_v27  ;;  %v2238_v49 = vld [vmem:[#allocation2 + $0x108] sm:$0xff] }
  0xed   :  { %vm299_vm3 = vcmp.eq.s32.totalorder %v2582_v31, %v293_v25  ;;  %1311 = vmatpush.bf16.msrb.mxu1 %v2297_v22 }
  0xee   :  { %1278 = vmatmul.bf16.vlgmr.msra.gmra.mxu3 %v2751_v26  ;;  %v2756_v20 = vpop.permute.xlu2 %204  ;;  %v1783_v55 = vsel %vm299_vm3, 1.0, %v2475_v34 }
  0xef   :  { %1619 = vmatpush.bf16.msrb.mxu2 %v2208_v5  ;;  %vm211_vm9 = vcmp.eq.s32.totalorder %v2582_v31, %v2756_v20  ;;  %v2296_v20 = vld [vmem:[#allocation5 + $0x158] sm:$0xff] }
  0xf0   :  { %v1775_v24 = vsel %vm211_vm9, 1.0, %v2475_v34  ;;  %1295 = vmatpush.bf16.msrb.mxu0 %v2286_v33 }
  0xf1   :  { %v235_v3 = vadd.f32 %v1775_v24, %v1771_v30  ;;  %1312 = vmatpush.bf16.msrb.mxu1 %v2296_v20  ;;  %v2228_v20 = vld [vmem:[#allocation2 + $0xb8] sm:$0xff] }
  0xf3   :  { %1620 = vmatpush.bf16.msrb.mxu2 %v2207_v36  ;;  %v2241_v36 = vld [vmem:[#allocation2 + $0x120] sm:$0xff]  ;;  %v239_v43 = vpack.c.bf16 %v235_v3, %v235_v3 }
  0xf5   :  { %v321_v46 = vpop.permute.xlu1 %320 }
  0xf6   :  { %vm327_vm2 = vcmp.eq.s32.totalorder %v2582_v31, %v321_v46  ;;  %v2252_v46 = vld [vmem:[#allocation2 + $0x178] sm:$0xff] }
  0xf7   :  { %1621 = vmatpush.bf16.msrb.mxu2 %v2206_v42  ;;  %v1787_v45 = vsel %vm327_vm2, 1.0, %v2475_v34  ;;  %v368_v47 = vpop.permute.xlu2 %367  ;;  %1710 = vmatpush.bf16.msra.mxu3 %v2252_v46 }
  0xf8   :  { %v351_v58 = vadd.f32 %v1787_v45, %v1783_v55  ;;  %vm372_vm6 = vcmp.eq.s32.totalorder %v2582_v31, %v368_v47  ;;  %v2295_v47 = vld [vmem:[#allocation5 + $0x150] sm:$0xff] }
  0xf9   :  { %v1792_v1 = vsel %vm372_vm6, 1.0, %v2475_v34  ;;  %1313 = vmatpush.bf16.msrb.mxu1 %v2295_v47 }
  0xfa   :  { %v355_v10 = vpack.c.bf16 %v351_v58, %v351_v58  ;;  %v396_v48 = vadd.f32 %v1792_v1, %v388_v7  ;;  %v271_v58 = vunpack.c.l.bf16 %v239_v43  ;;  %v2249_v1 = vld [vmem:[#allocation2 + $0x160] sm:$0xff]  ;;  %v2235_v43 = vld [vmem:[#allocation2 + $0xf0] sm:$0xff] }
  0xfb   :  { %1622 = vmatpush.bf16.msrb.mxu2 %v2205_v51  ;;  %1711 = vmatpush.bf16.msra.mxu3 %v2251_v35  ;;  %v2285_v51 = vld [vmem:[#allocation5 + $0x100] sm:$0xff] }
  0xfc   :  { %v387_v18 = vunpack.c.l.bf16 %v355_v10  ;;  %v400_v2 = vpack.c.bf16 %v396_v48, %v396_v48  ;;  %1296 = vmatpush.bf16.msrb.mxu0 %v2285_v51  ;;  %v279_v10 = vadd.f32 %v1779_v60, %v271_v58  ;;  %v272_v48 = vunpack.c.l.bf16 %v240_v0  ;;  %v2225_v58 = vld [vmem:[#allocation2 + $0xa0] sm:$0xff] }
  0xfe   :  { %v412_v32 = vpop.permute.xlu1 %411  ;;  %v692_v40 = vunpack.c.l.b16 %v400_v2  ;;  %v283_v44 = vpack.c.bf16 %v279_v10, %v279_v10 }
  0xff   :  { %vm416_vm4 = vcmp.eq.s32.totalorder %v2582_v31, %v412_v32  ;;  %1691 = vmatpush.bf16.msra.mxu2 %v2244_v62  ;;  %v471_v32 = vpack.c.bf16 %v467_v23, %v467_v23  ;;  %1712 = vmatpush.bf16.msra.mxu3 %v2250_v54  ;;  %v2247_v23 = vld [vmem:[#allocation2 + $0x150] sm:$0xff] }
 0x100   :  { %v1796_v63 = vsel %vm416_vm4, 1.0, %v2475_v34  ;;  %v679_v24 = vunpack.c.l.b16 %v283_v44  ;;  %1653 = vmatpush.bf16.msra.mxu0 %v2228_v20 }
 0x101   :  { %v484_v29 = vpop.permute.xlu2 %483  ;;  %v503_v50 = vunpack.c.l.bf16 %v471_v32  ;;  %v2245_v32 = vld [vmem:[#allocation2 + $0x140] sm:$0xff] }
 0x102   :  { %vm488_vm12 = vcmp.eq.s32.totalorder %v2582_v31, %v484_v29  ;;  %v2248_v29 = vld [vmem:[#allocation2 + $0x158] sm:$0xff] }
 0x103   :  { %1692 = vmatpush.bf16.msra.mxu2 %v2243_v8  ;;  %v1804_v5 = vsel %vm488_vm12, 1.0, %v2475_v34  ;;  %1713 = vmatpush.bf16.msra.mxu3 %v2249_v1 }
 0x104   :  { %1654 = vmatpush.bf16.msra.mxu0 %v2227_v41 }
 0x107   :  { %v440_v9 = vpop.permute.xlu1 %439  ;;  %1693 = vmatpush.bf16.msra.mxu2 %v2242_v28  ;;  %1714 = vmatpush.bf16.msra.mxu3 %v2248_v29 }
 0x108   :  { %vm444_vm5 = vcmp.eq.s32.totalorder %v2582_v31, %v440_v9  ;;  %v2240_v9 = vld [vmem:[#allocation2 + $0x118] sm:$0xff] }
 0x109   :  { %v1800_v59 = vsel %vm444_vm5, 1.0, %v2475_v34 }
 0x10a   :  { %v468_v6 = vadd.f32 %v1800_v59, %v1796_v63  ;;  %v519_v39 = vpop.permute.xlu2 %518  ;;  %v2294_v59 = vld [vmem:[#allocation5 + $0x148] sm:$0xff]  ;;  %v2239_v63 = vld [vmem:[#allocation2 + $0x110] sm:$0xff] }
 0x10b   :  { %1694 = vmatpush.bf16.msra.mxu2 %v2241_v36  ;;  %1314 = vmatpush.bf16.msrb.mxu1 %v2294_v59  ;;  %vm529_vm0 = vcmp.eq.s32.totalorder %v2582_v31, %v519_v39 }
 0x10c   :  { %v472_v13 = vpack.c.bf16 %v468_v6, %v468_v6  ;;  %1715 = vmatpush.bf16.msra.mxu3 %v2247_v23  ;;  %v1805_v27 = vsel %vm529_vm0, 1.0, %v2475_v34  ;;  %v2221_v23 = vld [vmem:[#allocation2 + $0x80] sm:$0xff] }
 0x10e   :  { %v504_v4 = vunpack.c.l.bf16 %v472_v13 }
 0x10f   :  { %1695 = vmatpush.bf16.msra.mxu2 %v2240_v9  ;;  %1315 = vmatpush.bf16.msrb.mxu1 %v2293_v61  ;;  %v2226_v9 = vld [vmem:[#allocation2 + $0xa8] sm:$0xff] }
 0x110   :  { %v365_v17 = vpop.permute.xlu1 %364  ;;  %v512_v42 = vadd.f32 %v1804_v5, %v504_v4  ;;  %v2246_v4 = vld [vmem:[#allocation2 + $0x148] sm:$0xff]  ;;  %1655 = vmatpush.bf16.msra.mxu0 %v2226_v9 }
 0x111   :  { %vm371_vm11 = vcmp.eq.s32.totalorder %v2582_v31, %v365_v17  ;;  %v550_v17 = vpop.permute.xlu0 %549  ;;  %1716 = vmatpush.bf16.msra.mxu3 %v2246_v4 }
 0x112   :  { %v1791_v25 = vsel %vm371_vm11, 1.0, %v2475_v34  ;;  %v516_v55 = vpack.c.bf16 %v512_v42, %v512_v42  ;;  %vm558_vm2 = vcmp.eq.s32.totalorder %v2582_v31, %v550_v17  ;;  %v2222_v17 = vld [vmem:[#allocation2 + $0x88] sm:$0xff] }
 0x113   :  { %v395_v15 = vadd.f32 %v1791_v25, %v387_v18  ;;  %1696 = vmatpush.bf16.msra.mxu2 %v2239_v63  ;;  %v547_v8 = vpop.permute.xlu2 %546  ;;  %v2237_v18 = vld [vmem:[#allocation2 + $0x100] sm:$0xff]  ;;  %v1810_v46 = vsel %vm558_vm2, 1.0, %v2475_v34 }
 0x114   :  { %v704_v7 = vunpack.c.l.b16 %v516_v55  ;;  %vm557_vm1 = vcmp.eq.s32.totalorder %v2582_v31, %v547_v8  ;;  %1656 = vmatpush.bf16.msra.mxu0 %v2225_v58 }
 0x115   :  { %v399_v56 = vpack.c.bf16 %v395_v15, %v395_v15  ;;  %v1809_v28 = vsel %vm557_vm1, 1.0, %v2475_v34  ;;  %1717 = vmatpush.bf16.msra.mxu3 %v2245_v32 }
 0x116   :  { %v581_v3 = vadd.f32 %v1809_v28, %v1805_v27 }
 0x117   :  { %v691_v38 = vunpack.c.l.b16 %v399_v56  ;;  %1697 = vmatpush.bf16.msra.mxu2 %v2238_v49 }
 0x118   :  { %v585_v36 = vpack.c.bf16 %v581_v3, %v581_v3 }
 0x119   :  { %v481_v19 = vpop.permute.xlu1 %480  ;;  %v2788_v45 = vpack.c.b16 %v692_v40, %v691_v38 }
 0x11a   :  { %vm487_vm13 = vcmp.eq.s32.totalorder %v2582_v31, %v481_v19  ;;  %v617_v19 = vunpack.c.l.bf16 %v585_v36 }
 0x11b   :  { %v1803_v53 = vsel %vm487_vm13, 1.0, %v2475_v34  ;;  %1264 = vmatmul.bf16.gmra.mxu2 %v2788_v45 }
 0x11c   :  { %v511_v57 = vadd.f32 %v1803_v53, %v503_v50  ;;  %1698 = vmatpush.bf16.msra.mxu2 %v2237_v18  ;;  %v594_v2 = vpop.permute.xlu2 %593  ;;  %v2234_v53 = vld [vmem:[#allocation2 + $0xe8] sm:$0xff] }
 0x11d   :  { %vm602_vm4 = vcmp.eq.s32.totalorder %v2582_v31, %v594_v2 }
 0x11e   :  { %v515_v62 = vpack.c.bf16 %v511_v57, %v511_v57  ;;  %v1814_v38 = vsel %vm602_vm4, 1.0, %v2475_v34 }
 0x120   :  { %v703_v6 = vunpack.c.l.b16 %v515_v62  ;;  %v2233_v62 = vld [vmem:[#allocation2 + $0xe0] sm:$0xff] }
 0x122   :  { %v252_v11 = vpop.permute.xlu1 %251  ;;  %v2797_v12 = vpack.c.b16 %v704_v7, %v703_v6  ;;  %v525_v6 = vpop.permute.xlu0 %524  ;;  %v2224_v7 = vld [vmem:[#allocation2 + $0x98] sm:$0xff] }
 0x123   :  { %vm256_vm15 = vcmp.eq.s32.totalorder %v2582_v31, %v252_v11  ;;  %v2232_v11 = vld [vmem:[#allocation2 + $0xd8] sm:$0xff]  ;;  %1657 = vmatpush.bf16.msra.mxu0 %v2224_v7  ;;  %vm531_vm9 = vcmp.eq.s32.totalorder %v2582_v31, %v525_v6  ;;  %v1222_v9 = vpop.f32.mrf.mxu0 }
 0x124   :  { %v1780_v21 = vsel %vm256_vm15, 1.0, %v2475_v34  ;;  %1283 = vmatmul.bf16.gmra.mxu3 %v2797_v12 }
 0x125   :  { %v280_v13 = vadd.f32 %v1780_v21, %v272_v48  ;;  %v638_v35 = vpop.permute.xlu2 %637  ;;  %v2231_v48 = vld [vmem:[#allocation2 + $0xd0] sm:$0xff]  ;;  %v1807_v21 = vsel %vm531_vm9, 1.0, %v2475_v34 }
 0x126   :  { %vm646_vm6 = vcmp.eq.s32.totalorder %v2582_v31, %v638_v35 }
 0x127   :  { %v284_v22 = vpack.c.bf16 %v280_v13, %v280_v13  ;;  %v1818_v55 = vsel %vm646_vm6, 1.0, %v2475_v34 }
 0x128   :  { %v658_v59 = vpack.c.bf16 %v1818_v55, %v1818_v55 }
 0x129   :  { %v680_v25 = vunpack.c.l.b16 %v284_v22  ;;  %v2230_v22 = vld [vmem:[#allocation2 + $0xc8] sm:$0xff] }
 0x12a   :  { %v726_v61 = vunpack.c.l.b16 %v658_v59  ;;  %v600_v2 = vpop.permute.xlu0 %599 }
 0x12b   :  { %v522_v15 = vpop.permute.xlu1 %521  ;;  %1623 = vmatmul.bf16.vlgmr.msrb.gmra.mxu2 %v2629_v16  ;;  %v2809_v30 = vpack.c.b16 %v680_v25, %v679_v24  ;;  %v2236_v16 = vld [vmem:[#allocation2 + $0xf8] sm:$0xff]  ;;  %v2229_v24 = vld [vmem:[#allocation2 + $0xc0] sm:$0xff]  ;;  %vm604_vm14 = vcmp.eq.s32.totalorder %v2582_v31, %v600_v2 }
 0x12c   :  { %vm530_vm3 = vcmp.eq.s32.totalorder %v2582_v31, %v522_v15  ;;  %1672 = vmatpush.bf16.msra.mxu1 %v2236_v16  ;;  %v1816_v32 = vsel %vm604_vm14, 1.0, %v2475_v34 }
 0x12d   :  { %v1806_v5 = vsel %vm530_vm3, 1.0, %v2475_v34  ;;  %1245 = vmatmul.bf16.gmra.mxu1 %v2809_v30 }
 0x12e   :  { %v582_v56 = vadd.f32 %v1810_v46, %v1806_v5  ;;  %v553_v60 = vpop.permute.xlu2 %552 }
 0x12f   :  { %vm559_vm8 = vcmp.eq.s32.totalorder %v2582_v31, %v553_v60 }
 0x130   :  { %v586_v33 = vpack.c.bf16 %v582_v56, %v582_v56  ;;  %1673 = vmatpush.bf16.msra.mxu1 %v2235_v43  ;;  %v1811_v29 = vsel %vm559_vm8, 1.0, %v2475_v34 }
 0x131   :  { %v583_v18 = vadd.f32 %v1811_v29, %v1807_v21 }
 0x132   :  { %v618_v40 = vunpack.c.l.bf16 %v586_v33 }
 0x133   :  { %v587_v25 = vpack.c.bf16 %v583_v18, %v583_v18 }
 0x134   :  { %v626_v42 = vadd.f32 %v1814_v38, %v618_v40  ;;  %v591_v39 = vpop.permute.xlu1 %590  ;;  %1642 = vmatmul.bf16.vlgmr.msrb.gmra.mxu3 %v2729_v52  ;;  %1674 = vmatpush.bf16.msra.mxu1 %v2234_v53 }
 0x135   :  { %vm601_vm5 = vcmp.eq.s32.totalorder %v2582_v31, %v591_v39  ;;  %v619_v15 = vunpack.c.l.bf16 %v587_v25 }
 0x136   :  { %v1813_v47 = vsel %vm601_vm5, 1.0, %v2475_v34  ;;  %v630_v50 = vpack.c.bf16 %v626_v42, %v626_v42 }
 0x137   :  { %v625_v51 = vadd.f32 %v1813_v47, %v617_v19  ;;  %v597_v13 = vpop.permute.xlu2 %596 }
 0x138   :  { %v714_v52 = vunpack.c.l.b16 %v630_v50  ;;  %1675 = vmatpush.bf16.msra.mxu1 %v2233_v62  ;;  %vm603_vm11 = vcmp.eq.s32.totalorder %v2582_v31, %v597_v13 }
 0x139   :  { %v629_v54 = vpack.c.bf16 %v625_v51, %v625_v51 }
 0x13b   :  { %v713_v57 = vunpack.c.l.b16 %v629_v54  ;;  %1628 = vmatmul.bf16.gmra.mxu2 %v2657_v14  ;;  %v2223_v14 = vld [vmem:[#allocation2 + $0x90] sm:$0xff] }
 0x13c   :  { %1676 = vmatpush.bf16.msra.mxu1 %v2232_v11  ;;  %1658 = vmatpush.bf16.msra.mxu0 %v2223_v14 }
 0x13d   :  { %v635_v63 = vpop.permute.xlu1 %634  ;;  %v717_v0 = vpack.c.b16 %v714_v52, %v713_v57  ;;  %v1224_v52 = vpop.f32.mrf.mxu0 }
 0x13e   :  { %vm645_vm7 = vcmp.eq.s32.totalorder %v2582_v31, %v635_v63 }
 0x13f   :  { %v1817_v1 = vsel %vm645_vm7, 1.0, %v2475_v34  ;;  %1297 = vmatmul.bf16.vlgmr.msrb.gmra.mxu0 %v717_v0 }
 0x140   :  { %v657_v10 = vpack.c.bf16 %v1817_v1, %v1817_v1  ;;  %1677 = vmatpush.bf16.msra.mxu1 %v2231_v48  ;;  %1659 = vmatpush.bf16.msra.mxu0 %v2222_v17 }
 0x141   :  { %v644_v27 = vpop.permute.xlu2 %643 }
 0x142   :  { %v725_v8 = vunpack.c.l.b16 %v657_v10  ;;  %vm648_vm13 = vcmp.eq.s32.totalorder %v2582_v31, %v644_v27 }
 0x143   :  { %v1820_v20 = vsel %vm648_vm13, 1.0, %v2475_v34 }
 0x144   :  { %1647 = vmatmul.bf16.gmra.mxu3 %v2809_v30  ;;  %v729_v49 = vpack.c.b16 %v726_v61, %v725_v8  ;;  %1678 = vmatpush.bf16.msra.mxu1 %v2230_v22  ;;  %v1815_v30 = vsel %vm603_vm11, 1.0, %v2475_v34  ;;  %v660_v16 = vpack.c.bf16 %v1820_v20, %v1820_v20 }
 0x145   :  { %1660 = vmatpush.bf16.msra.mxu0 %v2221_v23  ;;  %v627_v5 = vadd.f32 %v1815_v30, %v619_v15  ;;  %v1227_v60 = vpop.f32.mrf.mxu0 }
 0x146   :  { %v528_v44 = vpop.permute.xlu1 %527  ;;  %1316 = vmatmul.bf16.vlgmr.msrb.gmra.mxu1 %v729_v49  ;;  %v728_v39 = vunpack.c.l.b16 %v660_v16 }
 0x147   :  { %vm532_vm10 = vcmp.eq.s32.totalorder %v2582_v31, %v528_v44  ;;  %v631_v36 = vpack.c.bf16 %v627_v5, %v627_v5 }
 0x148   :  { %1679 = vmatpush.bf16.msra.mxu1 %v2229_v24  ;;  %v1808_v46 = vsel %vm532_vm10, 1.0, %v2475_v34 }
 0x149   :  { %v715_v43 = vunpack.c.l.b16 %v631_v36 }
 0x14b   :  { %1699 = vmatmul.bf16.vlgmr.msra.gmra.mxu2 %v717_v0 }
 0x14d   :  { %v1229_v0 = vpop.f32.mrf.mxu0 }
 0x14f   :  { %v556_v28 = vpop.permute.xlu1 %555 }
 0x150   :  { %vm560_vm12 = vcmp.eq.s32.totalorder %v2582_v31, %v556_v28 }
 0x151   :  { %v1812_v4 = vsel %vm560_vm12, 1.0, %v2475_v34 }
 0x152   :  { %v584_v3 = vadd.f32 %v1812_v4, %v1808_v46 }
 0x154   :  { %v588_v56 = vpack.c.bf16 %v584_v3, %v584_v3  ;;  %1718 = vmatmul.bf16.vlgmr.msra.gmra.mxu3 %v729_v49 }
 0x156   :  { %v620_v33 = vunpack.c.l.bf16 %v588_v56 }
 0x158   :  { %v628_v38 = vadd.f32 %v1816_v32, %v620_v33  ;;  %v641_v40 = vpop.permute.xlu1 %640  ;;  %v1241_v53 = vpop.f32.mrf.mxu1 }
 0x159   :  { %vm647_vm15 = vcmp.eq.s32.totalorder %v2582_v31, %v641_v40  ;;  %v1242_v49 = vadd.f32 %v1241_v53, %v1222_v9 }
 0x15a   :  { %v632_v35 = vpack.c.bf16 %v628_v38, %v628_v38  ;;  %v1819_v41 = vsel %vm647_vm15, 1.0, %v2475_v34 }
 0x15b   :  { %v659_v42 = vpack.c.bf16 %v1819_v41, %v1819_v41 }
 0x15c   :  { %v716_v19 = vunpack.c.l.b16 %v632_v35 }
 0x15d   :  { %v727_v47 = vunpack.c.l.b16 %v659_v42 }
 0x15e   :  { %v718_v50 = vpack.c.b16 %v716_v19, %v715_v43 }
 0x15f   :  { %v730_v51 = vpack.c.b16 %v728_v39, %v727_v47 }
 0x160   :  { %1302 = vmatmul.bf16.gmra.mxu0 %v718_v50  ;;  %1704 = vmatmul.bf16.gmra.mxu2 %v718_v50  ;;  %v1243_v59 = vpop.f32.mrf.mxu1 }
 0x161   :  { %1321 = vmatmul.bf16.gmra.mxu1 %v730_v51  ;;  %v1244_v22 = vadd.f32 %v1243_v59, %v1224_v52 }
 0x164   :  { %1723 = vmatmul.bf16.gmra.mxu3 %v730_v51 }
 0x168   :  { %v1260_v31 = vpop.f32.mrf.mxu2 }
 0x169   :  { %v1261_v29 = vadd.f32 %v1260_v31, %v1242_v49 }
 0x170   :  { %1661 = vmatmul.bf16.vlgmr.msra.gmra.mxu0 %v2742_v37  ;;  %v1262_v54 = vpop.f32.mrf.mxu2 }
 0x171   :  { %1680 = vmatmul.bf16.vlgmr.msra.gmra.mxu1 %v2751_v26  ;;  %v1279_v34 = vpop.f32.mrf.mxu3  ;;  %v1263_v25 = vadd.f32 %v1262_v54, %v1244_v22 }
 0x172   :  { %v1280_v44 = vadd.f32 %v1279_v34, %v1261_v29 }
 0x179   :  { %v1281_v55 = vpop.f32.mrf.mxu3 }
 0x17a   :  { %v1282_v2 = vadd.f32 %v1281_v55, %v1263_v25 }
 0x180   :  { %1666 = vmatmul.bf16.gmra.mxu0 %v2788_v45 }
 0x181   :  { %1685 = vmatmul.bf16.gmra.mxu1 %v2797_v12 }
 0x19e   :  { %v1265_v57 = vpop.f32.mrf.mxu2 }
 0x1a6   :  { %v1267_v62 = vpop.f32.mrf.mxu2 }
 0x1a7   :  { %v1284_v58 = vpop.f32.mrf.mxu3 }
 0x1aa   :  { %v1246_v63 = vpop.f32.mrf.mxu1 }
 0x1ab   :  { %v1247_v27 = vadd.f32 %v1246_v63, %v1227_v60 }
 0x1ad   :  { %v1266_v46 = vadd.f32 %v1265_v57, %v1247_v27 }
 0x1ae   :  { %v1624_v26 = vpop.f32.mrf.mxu2 }
 0x1af   :  { %v1286_v37 = vpop.f32.mrf.mxu3  ;;  %v1285_v33 = vadd.f32 %v1284_v58, %v1266_v46 }
 0x1b2   :  { %v1248_v1 = vpop.f32.mrf.mxu1 }
 0x1b3   :  { %v1249_v32 = vadd.f32 %v1248_v1, %v1229_v0 }
 0x1b5   :  { %v1268_v41 = vadd.f32 %v1267_v62, %v1249_v32 }
 0x1b6   :  { %v1626_v7 = vpop.f32.mrf.mxu2 }
 0x1b7   :  { %v1643_v45 = vpop.f32.mrf.mxu3  ;;  %v1287_v50 = vadd.f32 %v1286_v37, %v1268_v41 }
 0x1bc   :  { %v1298_v6 = vpop.f32.mrf.mxu0 }
 0x1bd   :  { %v1299_v13 = vadd.f32 %v1298_v6, %v1280_v44 }
 0x1be   :  { %v1629_v14 = vpop.f32.mrf.mxu2 }
 0x1bf   :  { %v1645_v10 = vpop.f32.mrf.mxu3 }
 0x1c3   :  { %v1317_v12 = vpop.f32.mrf.mxu1 }
 0x1c4   :  { %v1300_v61 = vpop.f32.mrf.mxu0  ;;  %v1318_v23 = vadd.f32 %v1317_v12, %v1299_v13 }
 0x1c5   :  { %v1301_v30 = vadd.f32 %v1300_v61, %v1282_v2 }
 0x1c6   :  { %v1631_v17 = vpop.f32.mrf.mxu2  ;;  %v1625_v15 = vadd.f32 %v1624_v26, %v1318_v23 }
 0x1c7   :  { %v1648_v8 = vpop.f32.mrf.mxu3 }
 0x1c8   :  { %v1644_v5 = vadd.f32 %v1643_v45, %v1625_v15 }
 0x1cb   :  { %v1319_v11 = vpop.f32.mrf.mxu1 }
 0x1cc   :  { %v1320_v4 = vadd.f32 %v1319_v11, %v1301_v30 }
 0x1ce   :  { %v1700_v3 = vpop.f32.mrf.mxu2  ;;  %v1627_v38 = vadd.f32 %v1626_v7, %v1320_v4 }
 0x1cf   :  { %v1650_v18 = vpop.f32.mrf.mxu3 }
 0x1d0   :  { %v1646_v19 = vadd.f32 %v1645_v10, %v1627_v38 }
 0x1d6   :  { %v1702_v9 = vpop.f32.mrf.mxu2 }
 0x1d7   :  { %v1719_v56 = vpop.f32.mrf.mxu3 }
 0x1dd   :  { %v1303_v48 = vpop.f32.mrf.mxu0 }
 0x1de   :  { %v1322_v21 = vpop.f32.mrf.mxu1  ;;  %v1304_v40 = vadd.f32 %v1303_v48, %v1285_v33 }
 0x1df   :  { %v1721_v53 = vpop.f32.mrf.mxu3 }
 0x1e0   :  { %v1323_v39 = vadd.f32 %v1322_v21, %v1304_v40 }
 0x1e2   :  { %v1630_v54 = vadd.f32 %v1629_v14, %v1323_v39 }
 0x1e3   :  { %v1705_v1 = vpop.f32.mrf.mxu2 }
 0x1e4   :  { %v1649_v60 = vadd.f32 %v1648_v8, %v1630_v54 }
 0x1e5   :  { %v1305_v24 = vpop.f32.mrf.mxu0 }
 0x1e6   :  { %v1324_v28 = vpop.f32.mrf.mxu1  ;;  %v1306_v55 = vadd.f32 %v1305_v24, %v1287_v50 }
 0x1e7   :  { %v1724_v6 = vpop.f32.mrf.mxu3 }
 0x1e8   :  { %v1325_v58 = vadd.f32 %v1324_v28, %v1306_v55 }
 0x1ea   :  { %v1632_v45 = vadd.f32 %v1631_v17, %v1325_v58 }
 0x1eb   :  { %v1707_v29 = vpop.f32.mrf.mxu2 }
 0x1ec   :  { %v1651_v10 = vadd.f32 %v1650_v18, %v1632_v45 }
 0x1ed   :  { %v1662_v20 = vpop.f32.mrf.mxu0 }
 0x1ee   :  { %v1663_v16 = vadd.f32 %v1662_v20, %v1644_v5  ;;  %v1681_v36 = vpop.f32.mrf.mxu1 }
 0x1ef   :  { %v1726_v21 = vpop.f32.mrf.mxu3 }
 0x1f0   :  { %v1682_v35 = vadd.f32 %v1681_v36, %v1663_v16 }
 0x1f2   :  { %v1701_v42 = vadd.f32 %v1700_v3, %v1682_v35 }
 0x1f4   :  { %v1720_v43 = vadd.f32 %v1719_v56, %v1701_v42 }
 0x1f5   :  { %v1664_v47 = vpop.f32.mrf.mxu0 }
 0x1f6   :  { %v1729_v51 = vmax.f32 %v1720_v43, 0.0  ;;  %v1665_v31 = vadd.f32 %v1664_v47, %v1646_v19  ;;  %v1683_v34 = vpop.f32.mrf.mxu1 }
 0x1f8   :  { %1733 = vst [vmem:[#allocation7] sm:$0xff] %v1729_v51  ;;  %v1684_v52 = vadd.f32 %v1683_v34, %v1665_v31 }
 0x1fa   :  { %v1703_v57 = vadd.f32 %v1702_v9, %v1684_v52 }
 0x1fc   :  { %v1722_v59 = vadd.f32 %v1721_v53, %v1703_v57 }
 0x1fd   :  { %v1667_v62 = vpop.f32.mrf.mxu0 }
 0x1fe   :  { %v1730_v63 = vmax.f32 %v1722_v59, 0.0  ;;  %v1668_v0 = vadd.f32 %v1667_v62, %v1649_v60  ;;  %v1686_v26 = vpop.f32.mrf.mxu1 }
 0x200   :  { %1734 = vst [vmem:[#allocation7 + $0x8] sm:$0xff] %v1730_v63  ;;  %v1687_v37 = vadd.f32 %v1686_v26, %v1668_v0 }
 0x202   :  { %v1706_v12 = vadd.f32 %v1705_v1, %v1687_v37 }
 0x204   :  { %v1725_v7 = vadd.f32 %v1724_v6, %v1706_v12 }
 0x205   :  { %v1669_v61 = vpop.f32.mrf.mxu0 }
 0x206   :  { %v1731_v11 = vmax.f32 %v1725_v7, 0.0  ;;  %v1670_v14 = vadd.f32 %v1669_v61, %v1651_v10  ;;  %v1688_v49 = vpop.f32.mrf.mxu1 }
 0x208   :  { %1735 = vst [vmem:[#allocation7 + $0x10] sm:$0xff] %v1731_v11  ;;  %v1689_v48 = vadd.f32 %v1688_v49, %v1670_v14 }
 0x20a   :  { %v1708_v8 = vadd.f32 %v1707_v29, %v1689_v48 }
 0x20c   :  { %v1727_v44 = vadd.f32 %v1726_v21, %v1708_v8 }
 0x20e   :  { %v1732_v13 = vmax.f32 %v1727_v44, 0.0 }
 0x210   :  { %1736 = vst [vmem:[#allocation7 + $0x18] sm:$0xff] %v1732_v13 }
 0x211   :  { %1749 = dma.vmem_to_hbm [thread:$0]  %s1742_s30, 512, %s1744_s6, [#allocation4], %s2481_s7, %s2481_s7, %s2482_s8  }
 0x212   :  { %2457 = dma.done.wait [#allocation4], 512  }
 0x213   :  { %2458 = vsyncadd [#allocation4], 4294966784 }
 0x214   :  { %1754 = vsyncpa [#allocation3], 1 }
 0x215   :  { %1755 = vsyncpa [#allocation6], 1 }
 0x216   :  { %1756 = vsyncpa [#allocation4], 1 }

</bundles_post_ra>
